<compile_context>
chip_gen: v7x
topology: tpu7x:2x2x1
jax: 0.10.0
libtpu: 0.0.40
codegen_flags: <defaults>
</compile_context>

<pallas_src>
import jax
import jax.numpy as jnp
import numpy as np
from jax.experimental import pallas as pl
from jax.experimental.pallas import tpu as pltpu


# ---------------------------------------------------------------------------
# Fused Pallas kernel (all LSTM layers + final Linear)
# ---------------------------------------------------------------------------
def make_lstm_pred_kernel(T, B, D, H, O, num_layers):
    def kernel(*args):
        x_ref = args[0]                               # (T*B, D), row = (t, b)
        layer_refs = args[1:1 + 3 * num_layers]       # per layer: Wih^T, Whh^T, bias
        lin_w_ref = args[1 + 3 * num_layers]          # (T*H, O)
        lin_b_ref = args[2 + 3 * num_layers]          # (1, O)
        out_ref = args[3 + 3 * num_layers]            # (B, O)

        inp = x_ref[...]                              # (T*B, in_dim), values (vregs)

        hs = None
        for layer in range(num_layers):
            wih = layer_refs[3 * layer][...]          # (in_dim, 4H)
            whh = layer_refs[3 * layer + 1][...]      # (H, 4H)
            b = layer_refs[3 * layer + 2][...]        # (1, 4H)

            # Hoisted input projection (+bias) for ALL timesteps: one MXU call.
            gx = jnp.dot(inp, wih, preferred_element_type=jnp.float32) + b   # (T*B, 4H)

            h = jnp.zeros((B, H), jnp.float32)
            c = jnp.zeros((B, H), jnp.float32)

            hs = []
            # Serial recurrence (latency bound); fully unrolled, static indices.
            for t in range(T):
                gates = gx[t * B:(t + 1) * B, :] + jnp.dot(
                    h, whh, preferred_element_type=jnp.float32)              # (B, 4H)
                i_f = jax.nn.sigmoid(gates[:, 0:2 * H])                      # [i | f]
                g = jnp.tanh(gates[:, 2 * H:3 * H])
                o = jax.nn.sigmoid(gates[:, 3 * H:4 * H])
                c = i_f[:, H:2 * H] * c + i_f[:, 0:H] * g
                h = o * jnp.tanh(c)
                hs.append(h)

            if layer < num_layers - 1:
                # Next layer's input: time-major rows (t, b); stays in vregs.
                inp = jnp.concatenate(hs, axis=0)     # (T*B, H)

        # Final Linear on the flattened per-batch sequence output:
        #   flat[b] = [h_0[b] | h_1[b] | ... | h_{T-1}[b]]   -> single MXU matmul.
        flat = jnp.concatenate(hs, axis=1)            # (B, T*H)
        out_ref[...] = (
            jnp.dot(flat, lin_w_ref[...], preferred_element_type=jnp.float32)
            + lin_b_ref[...]
        )

    return kernel


# ---------------------------------------------------------------------------
# Wrapper (pallas_call plumbing)
# ---------------------------------------------------------------------------
def lstm_pred_forward(x_btd, params):
    """x_btd: (B, T, input_dim) float32; zero initial hidden/cell state (init_hidden)."""
    B, T, D = x_btd.shape
    layers = params["lstm_layers"]
    num_layers = len(layers)
    H = layers[0][1].shape[0]
    O = params["lin_b"].shape[-1]

    # Time-major rows (t, b) so each layer's input projection is one big matmul.
    x_rows = jnp.transpose(x_btd, (1, 0, 2)).reshape(T * B, D)

    flat_inputs = [x_rows]
    for (w_ih_t, w_hh_t, b) in layers:
        flat_inputs.extend([w_ih_t, w_hh_t, b])
    flat_inputs.extend([params["lin_w_t"], params["lin_b"]])

    kernel = make_lstm_pred_kernel(T, B, D, H, O, num_layers)
    vmem_spec = pl.BlockSpec(memory_space=pltpu.MemorySpace.VMEM)

    # Single grid step: all weights/activations VMEM-resident, one (B, O) HBM write.
    # (For much larger hidden_size, tile the 4H gate dim with a grid axis instead.)
    return pl.pallas_call(
        kernel,
        out_shape=jax.ShapeDtypeStruct((B, O), jnp.float32),
        in_specs=[vmem_spec] * len(flat_inputs),
        out_specs=vmem_spec,
    )(*flat_inputs)


def make_params(key, input_dim, seq_length, hidden_size, num_layers, output_size):
    """Deterministic init mimicking PyTorch's uniform(-1/sqrt(H), 1/sqrt(H))."""
    H = hidden_size
    bound = 1.0 / np.sqrt(H)
    layers = []
    for layer in range(num_layers):
        in_d = input_dim if layer == 0 else H
        key, k1, k2, k3, k4 = jax.random.split(key, 5)
        w_ih = jax.random.uniform(k1, (4 * H, in_d), jnp.float32, -bound, bound)
        w_hh = jax.random.uniform(k2, (4 * H, H), jnp.float32, -bound, bound)
        b_ih = jax.random.uniform(k3, (4 * H,), jnp.float32, -bound, bound)
        b_hh = jax.random.uniform(k4, (4 * H,), jnp.float32, -bound, bound)
        layers.append((w_ih.T, w_hh.T, (b_ih + b_hh)[None, :]))
    F = H * seq_length
    bound_l = 1.0 / np.sqrt(F)
    key, k1, k2 = jax.random.split(key, 3)
    lin_w = jax.random.uniform(k1, (output_size, F), jnp.float32, -bound_l, bound_l)
    lin_b = jax.random.uniform(k2, (output_size,), jnp.float32, -bound_l, bound_l)
    return {"lstm_layers": layers, "lin_w_t": lin_w.T, "lin_b": lin_b[None, :]}


# ---------------------------------------------------------------------------
# Pure-JAX reference (for correctness check)
# ---------------------------------------------------------------------------
def reference_forward(x_btd, params):
    B, T, _ = x_btd.shape
    x = x_btd
    for (w_ih_t, w_hh_t, b) in params["lstm_layers"]:
        H = w_hh_t.shape[0]
        h = jnp.zeros((B, H), jnp.float32)
        c = jnp.zeros((B, H), jnp.float32)
        outs = []
        for t in range(T):
            gates = x[:, t, :] @ w_ih_t + h @ w_hh_t + b
            i = jax.nn.sigmoid(gates[:, 0:H])
            f = jax.nn.sigmoid(gates[:, H:2 * H])
            g = jnp.tanh(gates[:, 2 * H:3 * H])
            o = jax.nn.sigmoid(gates[:, 3 * H:4 * H])
            c = f * c + i * g
            h = o * jnp.tanh(c)
            outs.append(h)
        x = jnp.stack(outs, axis=1)
    return x.reshape(B, -1) @ params["lin_w_t"] + params["lin_b"]


if __name__ == "__main__":
    batch, seq_length, input_dim = 2, 8, 4
    hidden_size, num_layers, output_size = 32, 2, 8

    key = jax.random.PRNGKey(0)
    key, kx, kp = jax.random.split(key, 3)
    x = jax.random.normal(kx, (batch, seq_length, input_dim), jnp.float32)
    params = make_params(kp, input_dim, seq_length, hidden_size, num_layers, output_size)

    out = lstm_pred_forward(x, params)
    out = jax.block_until_ready(out)

    ref = reference_forward(x, params)
    np.testing.assert_allclose(np.asarray(out), np.asarray(ref), rtol=1e-5, atol=1e-5)

    print("KERNEL_OK")
</pallas_src>

<mosaic_0001>
module attributes {stable_mosaic.version = 11 : i64} {
  func.func @kernel(%arg0: memref<16x4xf32, #tpu.memory_space<vmem>>, %arg1: memref<4x128xf32, #tpu.memory_space<vmem>>, %arg2: memref<32x128xf32, #tpu.memory_space<vmem>>, %arg3: memref<1x128xf32, #tpu.memory_space<vmem>>, %arg4: memref<32x128xf32, #tpu.memory_space<vmem>>, %arg5: memref<32x128xf32, #tpu.memory_space<vmem>>, %arg6: memref<1x128xf32, #tpu.memory_space<vmem>>, %arg7: memref<256x8xf32, #tpu.memory_space<vmem>>, %arg8: memref<1x8xf32, #tpu.memory_space<vmem>>, %arg9: memref<2x8xf32, #tpu.memory_space<vmem>>) attributes {dimension_semantics = [], scalar_prefetch = 0 : i64, scratch_operands = 0 : i64, tpu.core_type = #tpu.core_type<tc>} {
    %c0 = arith.constant 0 : index
    %c0_0 = arith.constant 0 : index
    %0 = vector.load %arg0[%c0, %c0_0] : memref<16x4xf32, #tpu.memory_space<vmem>>, vector<16x4xf32>
    %c0_1 = arith.constant 0 : index
    %c0_2 = arith.constant 0 : index
    %1 = vector.load %arg1[%c0_1, %c0_2] : memref<4x128xf32, #tpu.memory_space<vmem>>, vector<4x128xf32>
    %c0_3 = arith.constant 0 : index
    %c0_4 = arith.constant 0 : index
    %2 = vector.load %arg2[%c0_3, %c0_4] : memref<32x128xf32, #tpu.memory_space<vmem>>, vector<32x128xf32>
    %c0_5 = arith.constant 0 : index
    %c0_6 = arith.constant 0 : index
    %3 = vector.load %arg3[%c0_5, %c0_6] : memref<1x128xf32, #tpu.memory_space<vmem>>, vector<1x128xf32>
    %cst = arith.constant dense<0.000000e+00> : vector<16x128xf32>
    %4 = tpu.matmul %0, %1, %cst {dimension_numbers = #tpu.dot_dimension_numbers<[1], [0], [0], [1], [0, 0, 1, 1], [], []>} : vector<16x4xf32>, vector<4x128xf32>, vector<16x128xf32> -> vector<16x128xf32>
    %5 = vector.broadcast %3 : vector<1x128xf32> to vector<16x128xf32>
    %6 = arith.addf %4, %5 : vector<16x128xf32>
    %cst_7 = arith.constant 0.000000e+00 : f32
    %7 = vector.broadcast %cst_7 : f32 to vector<2x32xf32>
    %cst_8 = arith.constant 0.000000e+00 : f32
    %8 = vector.broadcast %cst_8 : f32 to vector<2x32xf32>
    %9 = vector.extract_strided_slice %6 {offsets = [0, 0], sizes = [2, 128], strides = [1, 1]} : vector<16x128xf32> to vector<2x128xf32>
    %cst_9 = arith.constant dense<0.000000e+00> : vector<2x128xf32>
    %10 = tpu.matmul %7, %2, %cst_9 {dimension_numbers = #tpu.dot_dimension_numbers<[1], [0], [0], [1], [0, 0, 1, 1], [], []>} : vector<2x32xf32>, vector<32x128xf32>, vector<2x128xf32> -> vector<2x128xf32>
    %11 = arith.addf %9, %10 : vector<2x128xf32>
    %12 = vector.extract_strided_slice %11 {offsets = [0, 0], sizes = [2, 64], strides = [1, 1]} : vector<2x128xf32> to vector<2x64xf32>
    %13 = arith.negf %12 : vector<2x64xf32>
    %14 = math.exp %13 : vector<2x64xf32>
    %cst_10 = arith.constant 1.000000e+00 : f32
    %15 = vector.broadcast %cst_10 : f32 to vector<2x64xf32>
    %16 = arith.addf %15, %14 : vector<2x64xf32>
    %17 = arith.divf %15, %16 : vector<2x64xf32>
    %18 = vector.extract_strided_slice %11 {offsets = [0, 64], sizes = [2, 32], strides = [1, 1]} : vector<2x128xf32> to vector<2x32xf32>
    %19 = math.tanh %18 : vector<2x32xf32>
    %20 = vector.extract_strided_slice %11 {offsets = [0, 96], sizes = [2, 32], strides = [1, 1]} : vector<2x128xf32> to vector<2x32xf32>
    %21 = arith.negf %20 : vector<2x32xf32>
    %22 = math.exp %21 : vector<2x32xf32>
    %cst_11 = arith.constant 1.000000e+00 : f32
    %23 = vector.broadcast %cst_11 : f32 to vector<2x32xf32>
    %24 = arith.addf %23, %22 : vector<2x32xf32>
    %25 = arith.divf %23, %24 : vector<2x32xf32>
    %26 = vector.extract_strided_slice %17 {offsets = [0, 32], sizes = [2, 32], strides = [1, 1]} : vector<2x64xf32> to vector<2x32xf32>
    %27 = arith.mulf %26, %8 : vector<2x32xf32>
    %28 = vector.extract_strided_slice %17 {offsets = [0, 0], sizes = [2, 32], strides = [1, 1]} : vector<2x64xf32> to vector<2x32xf32>
    %29 = arith.mulf %28, %19 : vector<2x32xf32>
    %30 = arith.addf %27, %29 : vector<2x32xf32>
    %31 = math.tanh %30 : vector<2x32xf32>
    %32 = arith.mulf %25, %31 : vector<2x32xf32>
    %33 = vector.extract_strided_slice %6 {offsets = [2, 0], sizes = [2, 128], strides = [1, 1]} : vector<16x128xf32> to vector<2x128xf32>
    %cst_12 = arith.constant dense<0.000000e+00> : vector<2x128xf32>
    %34 = tpu.matmul %32, %2, %cst_12 {dimension_numbers = #tpu.dot_dimension_numbers<[1], [0], [0], [1], [0, 0, 1, 1], [], []>} : vector<2x32xf32>, vector<32x128xf32>, vector<2x128xf32> -> vector<2x128xf32>
    %35 = arith.addf %33, %34 : vector<2x128xf32>
    %36 = vector.extract_strided_slice %35 {offsets = [0, 0], sizes = [2, 64], strides = [1, 1]} : vector<2x128xf32> to vector<2x64xf32>
    %37 = arith.negf %36 : vector<2x64xf32>
    %38 = math.exp %37 : vector<2x64xf32>
    %cst_13 = arith.constant 1.000000e+00 : f32
    %39 = vector.broadcast %cst_13 : f32 to vector<2x64xf32>
    %40 = arith.addf %39, %38 : vector<2x64xf32>
    %41 = arith.divf %39, %40 : vector<2x64xf32>
    %42 = vector.extract_strided_slice %35 {offsets = [0, 64], sizes = [2, 32], strides = [1, 1]} : vector<2x128xf32> to vector<2x32xf32>
    %43 = math.tanh %42 : vector<2x32xf32>
    %44 = vector.extract_strided_slice %35 {offsets = [0, 96], sizes = [2, 32], strides = [1, 1]} : vector<2x128xf32> to vector<2x32xf32>
    %45 = arith.negf %44 : vector<2x32xf32>
    %46 = math.exp %45 : vector<2x32xf32>
    %cst_14 = arith.constant 1.000000e+00 : f32
    %47 = vector.broadcast %cst_14 : f32 to vector<2x32xf32>
    %48 = arith.addf %47, %46 : vector<2x32xf32>
    %49 = arith.divf %47, %48 : vector<2x32xf32>
    %50 = vector.extract_strided_slice %41 {offsets = [0, 32], sizes = [2, 32], strides = [1, 1]} : vector<2x64xf32> to vector<2x32xf32>
    %51 = arith.mulf %50, %30 : vector<2x32xf32>
    %52 = vector.extract_strided_slice %41 {offsets = [0, 0], sizes = [2, 32], strides = [1, 1]} : vector<2x64xf32> to vector<2x32xf32>
    %53 = arith.mulf %52, %43 : vector<2x32xf32>
    %54 = arith.addf %51, %53 : vector<2x32xf32>
    %55 = math.tanh %54 : vector<2x32xf32>
    %56 = arith.mulf %49, %55 : vector<2x32xf32>
    %57 = vector.extract_strided_slice %6 {offsets = [4, 0], sizes = [2, 128], strides = [1, 1]} : vector<16x128xf32> to vector<2x128xf32>
    %cst_15 = arith.constant dense<0.000000e+00> : vector<2x128xf32>
    %58 = tpu.matmul %56, %2, %cst_15 {dimension_numbers = #tpu.dot_dimension_numbers<[1], [0], [0], [1], [0, 0, 1, 1], [], []>} : vector<2x32xf32>, vector<32x128xf32>, vector<2x128xf32> -> vector<2x128xf32>
    %59 = arith.addf %57, %58 : vector<2x128xf32>
    %60 = vector.extract_strided_slice %59 {offsets = [0, 0], sizes = [2, 64], strides = [1, 1]} : vector<2x128xf32> to vector<2x64xf32>
    %61 = arith.negf %60 : vector<2x64xf32>
    %62 = math.exp %61 : vector<2x64xf32>
    %cst_16 = arith.constant 1.000000e+00 : f32
    %63 = vector.broadcast %cst_16 : f32 to vector<2x64xf32>
    %64 = arith.addf %63, %62 : vector<2x64xf32>
    %65 = arith.divf %63, %64 : vector<2x64xf32>
    %66 = vector.extract_strided_slice %59 {offsets = [0, 64], sizes = [2, 32], strides = [1, 1]} : vector<2x128xf32> to vector<2x32xf32>
    %67 = math.tanh %66 : vector<2x32xf32>
    %68 = vector.extract_strided_slice %59 {offsets = [0, 96], sizes = [2, 32], strides = [1, 1]} : vector<2x128xf32> to vector<2x32xf32>
    %69 = arith.negf %68 : vector<2x32xf32>
    %70 = math.exp %69 : vector<2x32xf32>
    %cst_17 = arith.constant 1.000000e+00 : f32
    %71 = vector.broadcast %cst_17 : f32 to vector<2x32xf32>
    %72 = arith.addf %71, %70 : vector<2x32xf32>
    %73 = arith.divf %71, %72 : vector<2x32xf32>
    %74 = vector.extract_strided_slice %65 {offsets = [0, 32], sizes = [2, 32], strides = [1, 1]} : vector<2x64xf32> to vector<2x32xf32>
    %75 = arith.mulf %74, %54 : vector<2x32xf32>
    %76 = vector.extract_strided_slice %65 {offsets = [0, 0], sizes = [2, 32], strides = [1, 1]} : vector<2x64xf32> to vector<2x32xf32>
    %77 = arith.mulf %76, %67 : vector<2x32xf32>
    %78 = arith.addf %75, %77 : vector<2x32xf32>
    %79 = math.tanh %78 : vector<2x32xf32>
    %80 = arith.mulf %73, %79 : vector<2x32xf32>
    %81 = vector.extract_strided_slice %6 {offsets = [6, 0], sizes = [2, 128], strides = [1, 1]} : vector<16x128xf32> to vector<2x128xf32>
    %cst_18 = arith.constant dense<0.000000e+00> : vector<2x128xf32>
    %82 = tpu.matmul %80, %2, %cst_18 {dimension_numbers = #tpu.dot_dimension_numbers<[1], [0], [0], [1], [0, 0, 1, 1], [], []>} : vector<2x32xf32>, vector<32x128xf32>, vector<2x128xf32> -> vector<2x128xf32>
    %83 = arith.addf %81, %82 : vector<2x128xf32>
    %84 = vector.extract_strided_slice %83 {offsets = [0, 0], sizes = [2, 64], strides = [1, 1]} : vector<2x128xf32> to vector<2x64xf32>
    %85 = arith.negf %84 : vector<2x64xf32>
    %86 = math.exp %85 : vector<2x64xf32>
    %cst_19 = arith.constant 1.000000e+00 : f32
    %87 = vector.broadcast %cst_19 : f32 to vector<2x64xf32>
    %88 = arith.addf %87, %86 : vector<2x64xf32>
    %89 = arith.divf %87, %88 : vector<2x64xf32>
    %90 = vector.extract_strided_slice %83 {offsets = [0, 64], sizes = [2, 32], strides = [1, 1]} : vector<2x128xf32> to vector<2x32xf32>
    %91 = math.tanh %90 : vector<2x32xf32>
    %92 = vector.extract_strided_slice %83 {offsets = [0, 96], sizes = [2, 32], strides = [1, 1]} : vector<2x128xf32> to vector<2x32xf32>
    %93 = arith.negf %92 : vector<2x32xf32>
    %94 = math.exp %93 : vector<2x32xf32>
    %cst_20 = arith.constant 1.000000e+00 : f32
    %95 = vector.broadcast %cst_20 : f32 to vector<2x32xf32>
    %96 = arith.addf %95, %94 : vector<2x32xf32>
    %97 = arith.divf %95, %96 : vector<2x32xf32>
    %98 = vector.extract_strided_slice %89 {offsets = [0, 32], sizes = [2, 32], strides = [1, 1]} : vector<2x64xf32> to vector<2x32xf32>
    %99 = arith.mulf %98, %78 : vector<2x32xf32>
    %100 = vector.extract_strided_slice %89 {offsets = [0, 0], sizes = [2, 32], strides = [1, 1]} : vector<2x64xf32> to vector<2x32xf32>
    %101 = arith.mulf %100, %91 : vector<2x32xf32>
    %102 = arith.addf %99, %101 : vector<2x32xf32>
    %103 = math.tanh %102 : vector<2x32xf32>
    %104 = arith.mulf %97, %103 : vector<2x32xf32>
    %105 = vector.extract_strided_slice %6 {offsets = [8, 0], sizes = [2, 128], strides = [1, 1]} : vector<16x128xf32> to vector<2x128xf32>
    %cst_21 = arith.constant dense<0.000000e+00> : vector<2x128xf32>
    %106 = tpu.matmul %104, %2, %cst_21 {dimension_numbers = #tpu.dot_dimension_numbers<[1], [0], [0], [1], [0, 0, 1, 1], [], []>} : vector<2x32xf32>, vector<32x128xf32>, vector<2x128xf32> -> vector<2x128xf32>
    %107 = arith.addf %105, %106 : vector<2x128xf32>
    %108 = vector.extract_strided_slice %107 {offsets = [0, 0], sizes = [2, 64], strides = [1, 1]} : vector<2x128xf32> to vector<2x64xf32>
    %109 = arith.negf %108 : vector<2x64xf32>
    %110 = math.exp %109 : vector<2x64xf32>
    %cst_22 = arith.constant 1.000000e+00 : f32
    %111 = vector.broadcast %cst_22 : f32 to vector<2x64xf32>
    %112 = arith.addf %111, %110 : vector<2x64xf32>
    %113 = arith.divf %111, %112 : vector<2x64xf32>
    %114 = vector.extract_strided_slice %107 {offsets = [0, 64], sizes = [2, 32], strides = [1, 1]} : vector<2x128xf32> to vector<2x32xf32>
    %115 = math.tanh %114 : vector<2x32xf32>
    %116 = vector.extract_strided_slice %107 {offsets = [0, 96], sizes = [2, 32], strides = [1, 1]} : vector<2x128xf32> to vector<2x32xf32>
    %117 = arith.negf %116 : vector<2x32xf32>
    %118 = math.exp %117 : vector<2x32xf32>
    %cst_23 = arith.constant 1.000000e+00 : f32
    %119 = vector.broadcast %cst_23 : f32 to vector<2x32xf32>
    %120 = arith.addf %119, %118 : vector<2x32xf32>
    %121 = arith.divf %119, %120 : vector<2x32xf32>
    %122 = vector.extract_strided_slice %113 {offsets = [0, 32], sizes = [2, 32], strides = [1, 1]} : vector<2x64xf32> to vector<2x32xf32>
    %123 = arith.mulf %122, %102 : vector<2x32xf32>
    %124 = vector.extract_strided_slice %113 {offsets = [0, 0], sizes = [2, 32], strides = [1, 1]} : vector<2x64xf32> to vector<2x32xf32>
    %125 = arith.mulf %124, %115 : vector<2x32xf32>
    %126 = arith.addf %123, %125 : vector<2x32xf32>
    %127 = math.tanh %126 : vector<2x32xf32>
    %128 = arith.mulf %121, %127 : vector<2x32xf32>
    %129 = vector.extract_strided_slice %6 {offsets = [10, 0], sizes = [2, 128], strides = [1, 1]} : vector<16x128xf32> to vector<2x128xf32>
    %cst_24 = arith.constant dense<0.000000e+00> : vector<2x128xf32>
    %130 = tpu.matmul %128, %2, %cst_24 {dimension_numbers = #tpu.dot_dimension_numbers<[1], [0], [0], [1], [0, 0, 1, 1], [], []>} : vector<2x32xf32>, vector<32x128xf32>, vector<2x128xf32> -> vector<2x128xf32>
    %131 = arith.addf %129, %130 : vector<2x128xf32>
    %132 = vector.extract_strided_slice %131 {offsets = [0, 0], sizes = [2, 64], strides = [1, 1]} : vector<2x128xf32> to vector<2x64xf32>
    %133 = arith.negf %132 : vector<2x64xf32>
    %134 = math.exp %133 : vector<2x64xf32>
    %cst_25 = arith.constant 1.000000e+00 : f32
    %135 = vector.broadcast %cst_25 : f32 to vector<2x64xf32>
    %136 = arith.addf %135, %134 : vector<2x64xf32>
    %137 = arith.divf %135, %136 : vector<2x64xf32>
    %138 = vector.extract_strided_slice %131 {offsets = [0, 64], sizes = [2, 32], strides = [1, 1]} : vector<2x128xf32> to vector<2x32xf32>
    %139 = math.tanh %138 : vector<2x32xf32>
    %140 = vector.extract_strided_slice %131 {offsets = [0, 96], sizes = [2, 32], strides = [1, 1]} : vector<2x128xf32> to vector<2x32xf32>
    %141 = arith.negf %140 : vector<2x32xf32>
    %142 = math.exp %141 : vector<2x32xf32>
    %cst_26 = arith.constant 1.000000e+00 : f32
    %143 = vector.broadcast %cst_26 : f32 to vector<2x32xf32>
    %144 = arith.addf %143, %142 : vector<2x32xf32>
    %145 = arith.divf %143, %144 : vector<2x32xf32>
    %146 = vector.extract_strided_slice %137 {offsets = [0, 32], sizes = [2, 32], strides = [1, 1]} : vector<2x64xf32> to vector<2x32xf32>
    %147 = arith.mulf %146, %126 : vector<2x32xf32>
    %148 = vector.extract_strided_slice %137 {offsets = [0, 0], sizes = [2, 32], strides = [1, 1]} : vector<2x64xf32> to vector<2x32xf32>
    %149 = arith.mulf %148, %139 : vector<2x32xf32>
    %150 = arith.addf %147, %149 : vector<2x32xf32>
    %151 = math.tanh %150 : vector<2x32xf32>
    %152 = arith.mulf %145, %151 : vector<2x32xf32>
    %153 = vector.extract_strided_slice %6 {offsets = [12, 0], sizes = [2, 128], strides = [1, 1]} : vector<16x128xf32> to vector<2x128xf32>
    %cst_27 = arith.constant dense<0.000000e+00> : vector<2x128xf32>
    %154 = tpu.matmul %152, %2, %cst_27 {dimension_numbers = #tpu.dot_dimension_numbers<[1], [0], [0], [1], [0, 0, 1, 1], [], []>} : vector<2x32xf32>, vector<32x128xf32>, vector<2x128xf32> -> vector<2x128xf32>
    %155 = arith.addf %153, %154 : vector<2x128xf32>
    %156 = vector.extract_strided_slice %155 {offsets = [0, 0], sizes = [2, 64], strides = [1, 1]} : vector<2x128xf32> to vector<2x64xf32>
    %157 = arith.negf %156 : vector<2x64xf32>
    %158 = math.exp %157 : vector<2x64xf32>
    %cst_28 = arith.constant 1.000000e+00 : f32
    %159 = vector.broadcast %cst_28 : f32 to vector<2x64xf32>
    %160 = arith.addf %159, %158 : vector<2x64xf32>
    %161 = arith.divf %159, %160 : vector<2x64xf32>
    %162 = vector.extract_strided_slice %155 {offsets = [0, 64], sizes = [2, 32], strides = [1, 1]} : vector<2x128xf32> to vector<2x32xf32>
    %163 = math.tanh %162 : vector<2x32xf32>
    %164 = vector.extract_strided_slice %155 {offsets = [0, 96], sizes = [2, 32], strides = [1, 1]} : vector<2x128xf32> to vector<2x32xf32>
    %165 = arith.negf %164 : vector<2x32xf32>
    %166 = math.exp %165 : vector<2x32xf32>
    %cst_29 = arith.constant 1.000000e+00 : f32
    %167 = vector.broadcast %cst_29 : f32 to vector<2x32xf32>
    %168 = arith.addf %167, %166 : vector<2x32xf32>
    %169 = arith.divf %167, %168 : vector<2x32xf32>
    %170 = vector.extract_strided_slice %161 {offsets = [0, 32], sizes = [2, 32], strides = [1, 1]} : vector<2x64xf32> to vector<2x32xf32>
    %171 = arith.mulf %170, %150 : vector<2x32xf32>
    %172 = vector.extract_strided_slice %161 {offsets = [0, 0], sizes = [2, 32], strides = [1, 1]} : vector<2x64xf32> to vector<2x32xf32>
    %173 = arith.mulf %172, %163 : vector<2x32xf32>
    %174 = arith.addf %171, %173 : vector<2x32xf32>
    %175 = math.tanh %174 : vector<2x32xf32>
    %176 = arith.mulf %169, %175 : vector<2x32xf32>
    %177 = vector.extract_strided_slice %6 {offsets = [14, 0], sizes = [2, 128], strides = [1, 1]} : vector<16x128xf32> to vector<2x128xf32>
    %cst_30 = arith.constant dense<0.000000e+00> : vector<2x128xf32>
    %178 = tpu.matmul %176, %2, %cst_30 {dimension_numbers = #tpu.dot_dimension_numbers<[1], [0], [0], [1], [0, 0, 1, 1], [], []>} : vector<2x32xf32>, vector<32x128xf32>, vector<2x128xf32> -> vector<2x128xf32>
    %179 = arith.addf %177, %178 : vector<2x128xf32>
    %180 = vector.extract_strided_slice %179 {offsets = [0, 0], sizes = [2, 64], strides = [1, 1]} : vector<2x128xf32> to vector<2x64xf32>
    %181 = arith.negf %180 : vector<2x64xf32>
    %182 = math.exp %181 : vector<2x64xf32>
    %cst_31 = arith.constant 1.000000e+00 : f32
    %183 = vector.broadcast %cst_31 : f32 to vector<2x64xf32>
    %184 = arith.addf %183, %182 : vector<2x64xf32>
    %185 = arith.divf %183, %184 : vector<2x64xf32>
    %186 = vector.extract_strided_slice %179 {offsets = [0, 64], sizes = [2, 32], strides = [1, 1]} : vector<2x128xf32> to vector<2x32xf32>
    %187 = math.tanh %186 : vector<2x32xf32>
    %188 = vector.extract_strided_slice %179 {offsets = [0, 96], sizes = [2, 32], strides = [1, 1]} : vector<2x128xf32> to vector<2x32xf32>
    %189 = arith.negf %188 : vector<2x32xf32>
    %190 = math.exp %189 : vector<2x32xf32>
    %cst_32 = arith.constant 1.000000e+00 : f32
    %191 = vector.broadcast %cst_32 : f32 to vector<2x32xf32>
    %192 = arith.addf %191, %190 : vector<2x32xf32>
    %193 = arith.divf %191, %192 : vector<2x32xf32>
    %194 = vector.extract_strided_slice %185 {offsets = [0, 32], sizes = [2, 32], strides = [1, 1]} : vector<2x64xf32> to vector<2x32xf32>
    %195 = arith.mulf %194, %174 : vector<2x32xf32>
    %196 = vector.extract_strided_slice %185 {offsets = [0, 0], sizes = [2, 32], strides = [1, 1]} : vector<2x64xf32> to vector<2x32xf32>
    %197 = arith.mulf %196, %187 : vector<2x32xf32>
    %198 = arith.addf %195, %197 : vector<2x32xf32>
    %199 = math.tanh %198 : vector<2x32xf32>
    %200 = arith.mulf %193, %199 : vector<2x32xf32>
    %201 = tpu.concatenate %32, %56, %80, %104, %128, %152, %176, %200 in 0 : vector<2x32xf32>, vector<2x32xf32>, vector<2x32xf32>, vector<2x32xf32>, vector<2x32xf32>, vector<2x32xf32>, vector<2x32xf32>, vector<2x32xf32> -> vector<16x32xf32>
    %c0_33 = arith.constant 0 : index
    %c0_34 = arith.constant 0 : index
    %202 = vector.load %arg4[%c0_33, %c0_34] : memref<32x128xf32, #tpu.memory_space<vmem>>, vector<32x128xf32>
    %c0_35 = arith.constant 0 : index
    %c0_36 = arith.constant 0 : index
    %203 = vector.load %arg5[%c0_35, %c0_36] : memref<32x128xf32, #tpu.memory_space<vmem>>, vector<32x128xf32>
    %c0_37 = arith.constant 0 : index
    %c0_38 = arith.constant 0 : index
    %204 = vector.load %arg6[%c0_37, %c0_38] : memref<1x128xf32, #tpu.memory_space<vmem>>, vector<1x128xf32>
    %cst_39 = arith.constant dense<0.000000e+00> : vector<16x128xf32>
    %205 = tpu.matmul %201, %202, %cst_39 {dimension_numbers = #tpu.dot_dimension_numbers<[1], [0], [0], [1], [0, 0, 1, 1], [], []>} : vector<16x32xf32>, vector<32x128xf32>, vector<16x128xf32> -> vector<16x128xf32>
    %206 = vector.broadcast %204 : vector<1x128xf32> to vector<16x128xf32>
    %207 = arith.addf %205, %206 : vector<16x128xf32>
    %cst_40 = arith.constant 0.000000e+00 : f32
    %208 = vector.broadcast %cst_40 : f32 to vector<2x32xf32>
    %cst_41 = arith.constant 0.000000e+00 : f32
    %209 = vector.broadcast %cst_41 : f32 to vector<2x32xf32>
    %210 = vector.extract_strided_slice %207 {offsets = [0, 0], sizes = [2, 128], strides = [1, 1]} : vector<16x128xf32> to vector<2x128xf32>
    %cst_42 = arith.constant dense<0.000000e+00> : vector<2x128xf32>
    %211 = tpu.matmul %208, %203, %cst_42 {dimension_numbers = #tpu.dot_dimension_numbers<[1], [0], [0], [1], [0, 0, 1, 1], [], []>} : vector<2x32xf32>, vector<32x128xf32>, vector<2x128xf32> -> vector<2x128xf32>
    %212 = arith.addf %210, %211 : vector<2x128xf32>
    %213 = vector.extract_strided_slice %212 {offsets = [0, 0], sizes = [2, 64], strides = [1, 1]} : vector<2x128xf32> to vector<2x64xf32>
    %214 = arith.negf %213 : vector<2x64xf32>
    %215 = math.exp %214 : vector<2x64xf32>
    %cst_43 = arith.constant 1.000000e+00 : f32
    %216 = vector.broadcast %cst_43 : f32 to vector<2x64xf32>
    %217 = arith.addf %216, %215 : vector<2x64xf32>
    %218 = arith.divf %216, %217 : vector<2x64xf32>
    %219 = vector.extract_strided_slice %212 {offsets = [0, 64], sizes = [2, 32], strides = [1, 1]} : vector<2x128xf32> to vector<2x32xf32>
    %220 = math.tanh %219 : vector<2x32xf32>
    %221 = vector.extract_strided_slice %212 {offsets = [0, 96], sizes = [2, 32], strides = [1, 1]} : vector<2x128xf32> to vector<2x32xf32>
    %222 = arith.negf %221 : vector<2x32xf32>
    %223 = math.exp %222 : vector<2x32xf32>
    %cst_44 = arith.constant 1.000000e+00 : f32
    %224 = vector.broadcast %cst_44 : f32 to vector<2x32xf32>
    %225 = arith.addf %224, %223 : vector<2x32xf32>
    %226 = arith.divf %224, %225 : vector<2x32xf32>
    %227 = vector.extract_strided_slice %218 {offsets = [0, 32], sizes = [2, 32], strides = [1, 1]} : vector<2x64xf32> to vector<2x32xf32>
    %228 = arith.mulf %227, %209 : vector<2x32xf32>
    %229 = vector.extract_strided_slice %218 {offsets = [0, 0], sizes = [2, 32], strides = [1, 1]} : vector<2x64xf32> to vector<2x32xf32>
    %230 = arith.mulf %229, %220 : vector<2x32xf32>
    %231 = arith.addf %228, %230 : vector<2x32xf32>
    %232 = math.tanh %231 : vector<2x32xf32>
    %233 = arith.mulf %226, %232 : vector<2x32xf32>
    %234 = vector.extract_strided_slice %207 {offsets = [2, 0], sizes = [2, 128], strides = [1, 1]} : vector<16x128xf32> to vector<2x128xf32>
    %cst_45 = arith.constant dense<0.000000e+00> : vector<2x128xf32>
    %235 = tpu.matmul %233, %203, %cst_45 {dimension_numbers = #tpu.dot_dimension_numbers<[1], [0], [0], [1], [0, 0, 1, 1], [], []>} : vector<2x32xf32>, vector<32x128xf32>, vector<2x128xf32> -> vector<2x128xf32>
    %236 = arith.addf %234, %235 : vector<2x128xf32>
    %237 = vector.extract_strided_slice %236 {offsets = [0, 0], sizes = [2, 64], strides = [1, 1]} : vector<2x128xf32> to vector<2x64xf32>
    %238 = arith.negf %237 : vector<2x64xf32>
    %239 = math.exp %238 : vector<2x64xf32>
    %cst_46 = arith.constant 1.000000e+00 : f32
    %240 = vector.broadcast %cst_46 : f32 to vector<2x64xf32>
    %241 = arith.addf %240, %239 : vector<2x64xf32>
    %242 = arith.divf %240, %241 : vector<2x64xf32>
    %243 = vector.extract_strided_slice %236 {offsets = [0, 64], sizes = [2, 32], strides = [1, 1]} : vector<2x128xf32> to vector<2x32xf32>
    %244 = math.tanh %243 : vector<2x32xf32>
    %245 = vector.extract_strided_slice %236 {offsets = [0, 96], sizes = [2, 32], strides = [1, 1]} : vector<2x128xf32> to vector<2x32xf32>
    %246 = arith.negf %245 : vector<2x32xf32>
    %247 = math.exp %246 : vector<2x32xf32>
    %cst_47 = arith.constant 1.000000e+00 : f32
    %248 = vector.broadcast %cst_47 : f32 to vector<2x32xf32>
    %249 = arith.addf %248, %247 : vector<2x32xf32>
    %250 = arith.divf %248, %249 : vector<2x32xf32>
    %251 = vector.extract_strided_slice %242 {offsets = [0, 32], sizes = [2, 32], strides = [1, 1]} : vector<2x64xf32> to vector<2x32xf32>
    %252 = arith.mulf %251, %231 : vector<2x32xf32>
    %253 = vector.extract_strided_slice %242 {offsets = [0, 0], sizes = [2, 32], strides = [1, 1]} : vector<2x64xf32> to vector<2x32xf32>
    %254 = arith.mulf %253, %244 : vector<2x32xf32>
    %255 = arith.addf %252, %254 : vector<2x32xf32>
    %256 = math.tanh %255 : vector<2x32xf32>
    %257 = arith.mulf %250, %256 : vector<2x32xf32>
    %258 = vector.extract_strided_slice %207 {offsets = [4, 0], sizes = [2, 128], strides = [1, 1]} : vector<16x128xf32> to vector<2x128xf32>
    %cst_48 = arith.constant dense<0.000000e+00> : vector<2x128xf32>
    %259 = tpu.matmul %257, %203, %cst_48 {dimension_numbers = #tpu.dot_dimension_numbers<[1], [0], [0], [1], [0, 0, 1, 1], [], []>} : vector<2x32xf32>, vector<32x128xf32>, vector<2x128xf32> -> vector<2x128xf32>
    %260 = arith.addf %258, %259 : vector<2x128xf32>
    %261 = vector.extract_strided_slice %260 {offsets = [0, 0], sizes = [2, 64], strides = [1, 1]} : vector<2x128xf32> to vector<2x64xf32>
    %262 = arith.negf %261 : vector<2x64xf32>
    %263 = math.exp %262 : vector<2x64xf32>
    %cst_49 = arith.constant 1.000000e+00 : f32
    %264 = vector.broadcast %cst_49 : f32 to vector<2x64xf32>
    %265 = arith.addf %264, %263 : vector<2x64xf32>
    %266 = arith.divf %264, %265 : vector<2x64xf32>
    %267 = vector.extract_strided_slice %260 {offsets = [0, 64], sizes = [2, 32], strides = [1, 1]} : vector<2x128xf32> to vector<2x32xf32>
    %268 = math.tanh %267 : vector<2x32xf32>
    %269 = vector.extract_strided_slice %260 {offsets = [0, 96], sizes = [2, 32], strides = [1, 1]} : vector<2x128xf32> to vector<2x32xf32>
    %270 = arith.negf %269 : vector<2x32xf32>
    %271 = math.exp %270 : vector<2x32xf32>
    %cst_50 = arith.constant 1.000000e+00 : f32
    %272 = vector.broadcast %cst_50 : f32 to vector<2x32xf32>
    %273 = arith.addf %272, %271 : vector<2x32xf32>
    %274 = arith.divf %272, %273 : vector<2x32xf32>
    %275 = vector.extract_strided_slice %266 {offsets = [0, 32], sizes = [2, 32], strides = [1, 1]} : vector<2x64xf32> to vector<2x32xf32>
    %276 = arith.mulf %275, %255 : vector<2x32xf32>
    %277 = vector.extract_strided_slice %266 {offsets = [0, 0], sizes = [2, 32], strides = [1, 1]} : vector<2x64xf32> to vector<2x32xf32>
    %278 = arith.mulf %277, %268 : vector<2x32xf32>
    %279 = arith.addf %276, %278 : vector<2x32xf32>
    %280 = math.tanh %279 : vector<2x32xf32>
    %281 = arith.mulf %274, %280 : vector<2x32xf32>
    %282 = vector.extract_strided_slice %207 {offsets = [6, 0], sizes = [2, 128], strides = [1, 1]} : vector<16x128xf32> to vector<2x128xf32>
    %cst_51 = arith.constant dense<0.000000e+00> : vector<2x128xf32>
    %283 = tpu.matmul %281, %203, %cst_51 {dimension_numbers = #tpu.dot_dimension_numbers<[1], [0], [0], [1], [0, 0, 1, 1], [], []>} : vector<2x32xf32>, vector<32x128xf32>, vector<2x128xf32> -> vector<2x128xf32>
    %284 = arith.addf %282, %283 : vector<2x128xf32>
    %285 = vector.extract_strided_slice %284 {offsets = [0, 0], sizes = [2, 64], strides = [1, 1]} : vector<2x128xf32> to vector<2x64xf32>
    %286 = arith.negf %285 : vector<2x64xf32>
    %287 = math.exp %286 : vector<2x64xf32>
    %cst_52 = arith.constant 1.000000e+00 : f32
    %288 = vector.broadcast %cst_52 : f32 to vector<2x64xf32>
    %289 = arith.addf %288, %287 : vector<2x64xf32>
    %290 = arith.divf %288, %289 : vector<2x64xf32>
    %291 = vector.extract_strided_slice %284 {offsets = [0, 64], sizes = [2, 32], strides = [1, 1]} : vector<2x128xf32> to vector<2x32xf32>
    %292 = math.tanh %291 : vector<2x32xf32>
    %293 = vector.extract_strided_slice %284 {offsets = [0, 96], sizes = [2, 32], strides = [1, 1]} : vector<2x128xf32> to vector<2x32xf32>
    %294 = arith.negf %293 : vector<2x32xf32>
    %295 = math.exp %294 : vector<2x32xf32>
    %cst_53 = arith.constant 1.000000e+00 : f32
    %296 = vector.broadcast %cst_53 : f32 to vector<2x32xf32>
    %297 = arith.addf %296, %295 : vector<2x32xf32>
    %298 = arith.divf %296, %297 : vector<2x32xf32>
    %299 = vector.extract_strided_slice %290 {offsets = [0, 32], sizes = [2, 32], strides = [1, 1]} : vector<2x64xf32> to vector<2x32xf32>
    %300 = arith.mulf %299, %279 : vector<2x32xf32>
    %301 = vector.extract_strided_slice %290 {offsets = [0, 0], sizes = [2, 32], strides = [1, 1]} : vector<2x64xf32> to vector<2x32xf32>
    %302 = arith.mulf %301, %292 : vector<2x32xf32>
    %303 = arith.addf %300, %302 : vector<2x32xf32>
    %304 = math.tanh %303 : vector<2x32xf32>
    %305 = arith.mulf %298, %304 : vector<2x32xf32>
    %306 = vector.extract_strided_slice %207 {offsets = [8, 0], sizes = [2, 128], strides = [1, 1]} : vector<16x128xf32> to vector<2x128xf32>
    %cst_54 = arith.constant dense<0.000000e+00> : vector<2x128xf32>
    %307 = tpu.matmul %305, %203, %cst_54 {dimension_numbers = #tpu.dot_dimension_numbers<[1], [0], [0], [1], [0, 0, 1, 1], [], []>} : vector<2x32xf32>, vector<32x128xf32>, vector<2x128xf32> -> vector<2x128xf32>
    %308 = arith.addf %306, %307 : vector<2x128xf32>
    %309 = vector.extract_strided_slice %308 {offsets = [0, 0], sizes = [2, 64], strides = [1, 1]} : vector<2x128xf32> to vector<2x64xf32>
    %310 = arith.negf %309 : vector<2x64xf32>
    %311 = math.exp %310 : vector<2x64xf32>
    %cst_55 = arith.constant 1.000000e+00 : f32
    %312 = vector.broadcast %cst_55 : f32 to vector<2x64xf32>
    %313 = arith.addf %312, %311 : vector<2x64xf32>
    %314 = arith.divf %312, %313 : vector<2x64xf32>
    %315 = vector.extract_strided_slice %308 {offsets = [0, 64], sizes = [2, 32], strides = [1, 1]} : vector<2x128xf32> to vector<2x32xf32>
    %316 = math.tanh %315 : vector<2x32xf32>
    %317 = vector.extract_strided_slice %308 {offsets = [0, 96], sizes = [2, 32], strides = [1, 1]} : vector<2x128xf32> to vector<2x32xf32>
    %318 = arith.negf %317 : vector<2x32xf32>
    %319 = math.exp %318 : vector<2x32xf32>
    %cst_56 = arith.constant 1.000000e+00 : f32
    %320 = vector.broadcast %cst_56 : f32 to vector<2x32xf32>
    %321 = arith.addf %320, %319 : vector<2x32xf32>
    %322 = arith.divf %320, %321 : vector<2x32xf32>
    %323 = vector.extract_strided_slice %314 {offsets = [0, 32], sizes = [2, 32], strides = [1, 1]} : vector<2x64xf32> to vector<2x32xf32>
    %324 = arith.mulf %323, %303 : vector<2x32xf32>
    %325 = vector.extract_strided_slice %314 {offsets = [0, 0], sizes = [2, 32], strides = [1, 1]} : vector<2x64xf32> to vector<2x32xf32>
    %326 = arith.mulf %325, %316 : vector<2x32xf32>
    %327 = arith.addf %324, %326 : vector<2x32xf32>
    %328 = math.tanh %327 : vector<2x32xf32>
    %329 = arith.mulf %322, %328 : vector<2x32xf32>
    %330 = vector.extract_strided_slice %207 {offsets = [10, 0], sizes = [2, 128], strides = [1, 1]} : vector<16x128xf32> to vector<2x128xf32>
    %cst_57 = arith.constant dense<0.000000e+00> : vector<2x128xf32>
    %331 = tpu.matmul %329, %203, %cst_57 {dimension_numbers = #tpu.dot_dimension_numbers<[1], [0], [0], [1], [0, 0, 1, 1], [], []>} : vector<2x32xf32>, vector<32x128xf32>, vector<2x128xf32> -> vector<2x128xf32>
    %332 = arith.addf %330, %331 : vector<2x128xf32>
    %333 = vector.extract_strided_slice %332 {offsets = [0, 0], sizes = [2, 64], strides = [1, 1]} : vector<2x128xf32> to vector<2x64xf32>
    %334 = arith.negf %333 : vector<2x64xf32>
    %335 = math.exp %334 : vector<2x64xf32>
    %cst_58 = arith.constant 1.000000e+00 : f32
    %336 = vector.broadcast %cst_58 : f32 to vector<2x64xf32>
    %337 = arith.addf %336, %335 : vector<2x64xf32>
    %338 = arith.divf %336, %337 : vector<2x64xf32>
    %339 = vector.extract_strided_slice %332 {offsets = [0, 64], sizes = [2, 32], strides = [1, 1]} : vector<2x128xf32> to vector<2x32xf32>
    %340 = math.tanh %339 : vector<2x32xf32>
    %341 = vector.extract_strided_slice %332 {offsets = [0, 96], sizes = [2, 32], strides = [1, 1]} : vector<2x128xf32> to vector<2x32xf32>
    %342 = arith.negf %341 : vector<2x32xf32>
    %343 = math.exp %342 : vector<2x32xf32>
    %cst_59 = arith.constant 1.000000e+00 : f32
    %344 = vector.broadcast %cst_59 : f32 to vector<2x32xf32>
    %345 = arith.addf %344, %343 : vector<2x32xf32>
    %346 = arith.divf %344, %345 : vector<2x32xf32>
    %347 = vector.extract_strided_slice %338 {offsets = [0, 32], sizes = [2, 32], strides = [1, 1]} : vector<2x64xf32> to vector<2x32xf32>
    %348 = arith.mulf %347, %327 : vector<2x32xf32>
    %349 = vector.extract_strided_slice %338 {offsets = [0, 0], sizes = [2, 32], strides = [1, 1]} : vector<2x64xf32> to vector<2x32xf32>
    %350 = arith.mulf %349, %340 : vector<2x32xf32>
    %351 = arith.addf %348, %350 : vector<2x32xf32>
    %352 = math.tanh %351 : vector<2x32xf32>
    %353 = arith.mulf %346, %352 : vector<2x32xf32>
    %354 = vector.extract_strided_slice %207 {offsets = [12, 0], sizes = [2, 128], strides = [1, 1]} : vector<16x128xf32> to vector<2x128xf32>
    %cst_60 = arith.constant dense<0.000000e+00> : vector<2x128xf32>
    %355 = tpu.matmul %353, %203, %cst_60 {dimension_numbers = #tpu.dot_dimension_numbers<[1], [0], [0], [1], [0, 0, 1, 1], [], []>} : vector<2x32xf32>, vector<32x128xf32>, vector<2x128xf32> -> vector<2x128xf32>
    %356 = arith.addf %354, %355 : vector<2x128xf32>
    %357 = vector.extract_strided_slice %356 {offsets = [0, 0], sizes = [2, 64], strides = [1, 1]} : vector<2x128xf32> to vector<2x64xf32>
    %358 = arith.negf %357 : vector<2x64xf32>
    %359 = math.exp %358 : vector<2x64xf32>
    %cst_61 = arith.constant 1.000000e+00 : f32
    %360 = vector.broadcast %cst_61 : f32 to vector<2x64xf32>
    %361 = arith.addf %360, %359 : vector<2x64xf32>
    %362 = arith.divf %360, %361 : vector<2x64xf32>
    %363 = vector.extract_strided_slice %356 {offsets = [0, 64], sizes = [2, 32], strides = [1, 1]} : vector<2x128xf32> to vector<2x32xf32>
    %364 = math.tanh %363 : vector<2x32xf32>
    %365 = vector.extract_strided_slice %356 {offsets = [0, 96], sizes = [2, 32], strides = [1, 1]} : vector<2x128xf32> to vector<2x32xf32>
    %366 = arith.negf %365 : vector<2x32xf32>
    %367 = math.exp %366 : vector<2x32xf32>
    %cst_62 = arith.constant 1.000000e+00 : f32
    %368 = vector.broadcast %cst_62 : f32 to vector<2x32xf32>
    %369 = arith.addf %368, %367 : vector<2x32xf32>
    %370 = arith.divf %368, %369 : vector<2x32xf32>
    %371 = vector.extract_strided_slice %362 {offsets = [0, 32], sizes = [2, 32], strides = [1, 1]} : vector<2x64xf32> to vector<2x32xf32>
    %372 = arith.mulf %371, %351 : vector<2x32xf32>
    %373 = vector.extract_strided_slice %362 {offsets = [0, 0], sizes = [2, 32], strides = [1, 1]} : vector<2x64xf32> to vector<2x32xf32>
    %374 = arith.mulf %373, %364 : vector<2x32xf32>
    %375 = arith.addf %372, %374 : vector<2x32xf32>
    %376 = math.tanh %375 : vector<2x32xf32>
    %377 = arith.mulf %370, %376 : vector<2x32xf32>
    %378 = vector.extract_strided_slice %207 {offsets = [14, 0], sizes = [2, 128], strides = [1, 1]} : vector<16x128xf32> to vector<2x128xf32>
    %cst_63 = arith.constant dense<0.000000e+00> : vector<2x128xf32>
    %379 = tpu.matmul %377, %203, %cst_63 {dimension_numbers = #tpu.dot_dimension_numbers<[1], [0], [0], [1], [0, 0, 1, 1], [], []>} : vector<2x32xf32>, vector<32x128xf32>, vector<2x128xf32> -> vector<2x128xf32>
    %380 = arith.addf %378, %379 : vector<2x128xf32>
    %381 = vector.extract_strided_slice %380 {offsets = [0, 0], sizes = [2, 64], strides = [1, 1]} : vector<2x128xf32> to vector<2x64xf32>
    %382 = arith.negf %381 : vector<2x64xf32>
    %383 = math.exp %382 : vector<2x64xf32>
    %cst_64 = arith.constant 1.000000e+00 : f32
    %384 = vector.broadcast %cst_64 : f32 to vector<2x64xf32>
    %385 = arith.addf %384, %383 : vector<2x64xf32>
    %386 = arith.divf %384, %385 : vector<2x64xf32>
    %387 = vector.extract_strided_slice %380 {offsets = [0, 64], sizes = [2, 32], strides = [1, 1]} : vector<2x128xf32> to vector<2x32xf32>
    %388 = math.tanh %387 : vector<2x32xf32>
    %389 = vector.extract_strided_slice %380 {offsets = [0, 96], sizes = [2, 32], strides = [1, 1]} : vector<2x128xf32> to vector<2x32xf32>
    %390 = arith.negf %389 : vector<2x32xf32>
    %391 = math.exp %390 : vector<2x32xf32>
    %cst_65 = arith.constant 1.000000e+00 : f32
    %392 = vector.broadcast %cst_65 : f32 to vector<2x32xf32>
    %393 = arith.addf %392, %391 : vector<2x32xf32>
    %394 = arith.divf %392, %393 : vector<2x32xf32>
    %395 = vector.extract_strided_slice %386 {offsets = [0, 32], sizes = [2, 32], strides = [1, 1]} : vector<2x64xf32> to vector<2x32xf32>
    %396 = arith.mulf %395, %375 : vector<2x32xf32>
    %397 = vector.extract_strided_slice %386 {offsets = [0, 0], sizes = [2, 32], strides = [1, 1]} : vector<2x64xf32> to vector<2x32xf32>
    %398 = arith.mulf %397, %388 : vector<2x32xf32>
    %399 = arith.addf %396, %398 : vector<2x32xf32>
    %400 = math.tanh %399 : vector<2x32xf32>
    %401 = arith.mulf %394, %400 : vector<2x32xf32>
    %402 = tpu.concatenate %233, %257, %281, %305, %329, %353, %377, %401 in 1 : vector<2x32xf32>, vector<2x32xf32>, vector<2x32xf32>, vector<2x32xf32>, vector<2x32xf32>, vector<2x32xf32>, vector<2x32xf32>, vector<2x32xf32> -> vector<2x256xf32>
    %c0_66 = arith.constant 0 : index
    %c0_67 = arith.constant 0 : index
    %403 = vector.load %arg7[%c0_66, %c0_67] : memref<256x8xf32, #tpu.memory_space<vmem>>, vector<256x8xf32>
    %cst_68 = arith.constant dense<0.000000e+00> : vector<2x8xf32>
    %404 = tpu.matmul %402, %403, %cst_68 {dimension_numbers = #tpu.dot_dimension_numbers<[1], [0], [0], [1], [0, 0, 1, 1], [], []>} : vector<2x256xf32>, vector<256x8xf32>, vector<2x8xf32> -> vector<2x8xf32>
    %c0_69 = arith.constant 0 : index
    %c0_70 = arith.constant 0 : index
    %405 = vector.load %arg8[%c0_69, %c0_70] : memref<1x8xf32, #tpu.memory_space<vmem>>, vector<1x8xf32>
    %406 = vector.broadcast %405 : vector<1x8xf32> to vector<2x8xf32>
    %407 = arith.addf %404, %406 : vector<2x8xf32>
    %c0_71 = arith.constant 0 : index
    %c0_72 = arith.constant 0 : index
    %408 = vector.load %arg9[%c0_71, %c0_72] : memref<2x8xf32, #tpu.memory_space<vmem>>, vector<2x8xf32>
    tpu.vector_store %arg9[%c0_71, %c0_72], %407 {strides = array<i32>} : memref<2x8xf32, #tpu.memory_space<vmem>>, vector<2x8xf32>,
    return
  }
}

</mosaic_0001>

<bundles_post_ra>
// kernel: tpu_custom_call.1
= control target key start
LH: loop header
LB: loop body
LE: loop exit
PB: predicated region body
PF: predicated region fallthrough
CT: control target
= control target key end

     0   :  { %vm54_vm0 = vcmask 1043456   ;;  %vm47_vm1 = vcmask 31744   ;;  %v2733_v8 = vmov 0.0|0.0   ;;  %s3229_s0 = inlined_call_operand.vmem [shape: f32[16,4], index: 0, kind: input, shape index: {}]   ;;  %s3230_s1 = inlined_call_operand.vmem [shape: f32[4,128], index: 1, kind: input, shape index: {}]   ;;  %s3231_s2 = inlined_call_operand.vmem [shape: f32[32,128], index: 2, kind: input, shape index: {}]   ;;  %s3232_s3 = inlined_call_operand.vmem [shape: f32[1,128], index: 3, kind: input, shape index: {}]   ;;  %s3233_s4 = inlined_call_operand.vmem [shape: f32[32,128], index: 4, kind: input, shape index: {}]   ;;  %s3234_s5 = inlined_call_operand.vmem [shape: f32[32,128], index: 5, kind: input, shape index: {}]   ;;  %s3235_s6 = inlined_call_operand.vmem [shape: f32[1,128], index: 6, kind: input, shape index: {}]   ;;  %s3236_s7 = inlined_call_operand.vmem [shape: f32[256,8], index: 7, kind: input, shape index: {}]   ;;  %s3237_s8 = inlined_call_operand.vmem [shape: f32[1,8], index: 8, kind: input, shape index: {}]   ;;  %s3238_s9 = inlined_call_operand.hbm [shape: f32[2,8], index: 9, kind: output, shape index: {}]  }
   0x1   :  { %v35_v0 = vld [vmem:[%s3230_s1] sm:$0xf]  ;;  %v34_v2 = vld [vmem:[%s3229_s0 + $0x8] sm:$0xff]  ;;  %v38_v5 = vld [vmem:[%s3231_s2 + $0x10] sm:$0xff]  ;;  %2446 = vmatprep.subr.bf16.mxu0 %v2733_v8 }
   0x2   :  { %v33_v1 = vld [vmem:[%s3229_s0] sm:$0xff]  ;;  %2236 = vmatprep.subr.msk.mxu1 %vm54_vm0, %v35_v0  ;;  %v37_v4 = vld [vmem:[%s3231_s2 + $0x8] sm:$0xff]  ;;  %v39_v7 = vld [vmem:[%s3231_s2 + $0x18] sm:$0xff] }
   0x3   :  { %2238 = vmatprep.mubr.msk.f32.mxu1 %vm47_vm1, %v33_v1  ;;  %v36_v3 = vld [vmem:[%s3231_s2] sm:$0xff]  ;;  %2237 = vmatpush3.msk.msra.mxu1 %vm54_vm0, %v35_v0 }
   0x4   :  { %v2810_v6 = vpack.c.bf16 %v37_v4, %v36_v3 }
   0x5   :  { %14 = vsyncpa [#allocation3], 0  ;;  %2239 = vmatmul.mubr.msk.f32.vlgmr.msra.gmra.mrb[0].mxu1 %vm47_vm1, %v34_v2  ;;  %2428 = vmatprep.subr.bf16.mxu1 %v2733_v8  ;;  %v2818_v9 = vpack.c.bf16 %v39_v7, %v38_v5  ;;  %vm2734_vm2 = vmmov 0   ;;  %v2735_v10 = vmov 0.0   ;;  %v2074_v11 = vld [vmem:[%s3232_s3] ss:$0 sm:$0xff] }
   0x6   :  { %2430 = vmatpush3.bf16.msra.mxu1 %v2810_v6  ;;  %2249 = vmatprep.mubr.msk.f32.mxu1 %vm2734_vm2, %v2735_v10  ;;  %s2736_s22 = smov 64   ;;  %s2737_s3 = smov 32   ;;  %vm133_vm3 = vcmask 261120   ;;  %vm976_vm4 = vcmask 1041408   ;;  %vm979_vm5 = vcmask 1045504   ;;  %vm1942_vm6 = vcmask 523264  }
   0x7   :  { %2431 = vmatprep.subr.bf16.mxu1 %v2733_v8  ;;  %2448 = vmatpush3.bf16.msra.mxu0 %v2810_v6  ;;  %s2738_s24 = smov 96   ;;  %vm1944_vm7 = vcmask 785408   ;;  %s2739_s25 = smov [#allocation2]   ;;  %vm2058_vm8 = vcmask 58368  }
   0x8   :  { %2449 = vmatprep.subr.bf16.mxu0 %v2733_v8  ;;  %2282 = vmatprep.mubr.msk.f32.mxu0 %vm2734_vm2, %v2735_v10  ;;  %s2066_s26 = sshll.u32 %s2739_s25, 4  ;;  %s2067_s26 = int_to_ptr.vmem [resolvable:$true] %s2066_s26 }
   0x9   :  { %s2709_s27 = scalar_lea.vmem %s2067_s26, 32  ;;  %p2714_p1 = scmp.lt.s32.totalorder %s2067_s26, %s2067_s26 }
   0xa   :  { %2433 = vmatpush3.bf16.msra.mxu1 %v2818_v9  ;;  %p2710_p0 = scmp.ne.s32.totalorder %s2067_s26, %s2709_s27  ;;  %p2715_p2 = scmp.lt.s32.totalorder %s2709_s27, %s2709_s27 }
   0xb   :  { %2434 = vmatprep.subr.bf16.mxu1 %v2733_v8  ;;  %2451 = vmatpush3.bf16.msra.mxu0 %v2818_v9 }
   0xc   :  { %2458 = vmatprep.subr.bf16.mxu0 %v2733_v8  ;;  %p2716_p3 = por %p2715_p2, %p2714_p1 }
   0xd   :  { %2250 = vmatmul.mubr.f32.vlgmr.msra.gmra.mrb[2].mxu1 %v2735_v10 }
   0xe   :  { %2436 = vmatpush3.bf16.msra.mxu1 %v2810_v6  ;;  %2260 = vmatprep.mubr.msk.f32.mxu1 %vm2734_vm2, %v2735_v10  ;;  %p2717_p4 = pnand %p2716_p3, %p2710_p0 }
   0xf   :  { %2437 = vmatprep.subr.bf16.mxu1 %v2733_v8 }
  0x12   :  { %2439 = vmatpush3.bf16.msra.mxu1 %v2818_v9 }
  0x13   :  { %2440 = vmatprep.subr.bf16.mxu1 %v2733_v8 }
  0xd8   :  { %v2240_v12 = vpop.f32.mrb[0].mxu1 }
  0xd9   :  { %v2841_v13 = vadd.f32 %v2240_v12, %v2074_v11  ;;  %v124_v14 = vpop.f32.mrb[1].mxu1 }
  0xda   :  { %v2843_v15 = vadd.f32 %v2074_v11, %v124_v14 }
  0xe0   :  { %v203_v16 = vpop.f32.mrb[2].mxu1 }
  0xe1   :  { %v207_v17 = vadd.f32 %v203_v16, %v2843_v15  ;;  %v2251_v18 = vpop.f32.mrb[3].mxu1 }
  0xe3   :  { %2581 = vtanh.f32 %v207_v17  ;;  %v2078_v20 = vmul.f32 -1.442695, %v207_v17 }
  0xe5   :  { %2583 = vpow2.f32 %v2078_v20 }
  0xed   :  { %v2582_v19 = vpop.eup %2581 }
  0xee   :  { %217 = vrot.lane.b32.xlu0 %v2582_v19, %s2736_s22 }
  0xef   :  { %v2584_v21 = vpop.eup %2583 }
  0xf0   :  { %v211_v22 = vadd.f32 1.0, %v2584_v21 }
  0xf2   :  { %2585 = vrcp.f32 %v211_v22 }
  0xfc   :  { %v2586_v23 = vpop.eup %2585 }
  0xfd   :  { %v215_v26 = vmul.f32 0.0, %v2586_v23 }
 0x160   :  { %v218_v24 = vpop.permute.xlu0 %217 }
 0x161   :  { %v220_v25 = vmul.f32 %v2586_v23, %v218_v24 }
 0x163   :  { %222 = vrot.lane.b32.xlu0 %v220_v25, %s2737_s3 }
 0x1d5   :  { %v223_v27 = vpop.permute.xlu0 %222 }
 0x1d6   :  { %v225_v28 = vadd.f32 %v223_v27, %v215_v26 }
 0x1d8   :  { %2587 = vtanh.f32 %v225_v28  ;;  %v319_v44 = vrot.slane %v225_v28, 6 }
 0x1e2   :  { %v2588_v29 = vpop.eup %2587 }
 0x1e3   :  { %228 = vrot.lane.b32.xlu1 %v2588_v29, %s2736_s22 }
 0x255   :  { %v229_v30 = vpop.permute.xlu1 %228 }
 0x256   :  { %v2849_v31 = vmul.f32 %v2586_v23, %v229_v30 }
 0x258   :  { %233 = vrot.lane.b32.xlu1 %v2849_v31, %s2737_s3 }
 0x2ca   :  { %v234_v32 = vpop.permute.xlu1 %233 }
 0x2cb   :  { %2261 = vmatmul.mubr.msk.f32.vlgmr.msra.gmra.mrb[4].mxu1 %vm133_vm3, %v234_v32 }
 0x2cc   :  { %2442 = vmatpush3.bf16.msra.mxu1 %v2810_v6  ;;  %2271 = vmatprep.mubr.msk.f32.mxu1 %vm2734_vm2, %v2735_v10 }
 0x2cd   :  { %2443 = vmatprep.subr.bf16.mxu1 %v2733_v8 }
 0x2d0   :  { %2445 = vmatpush3.bf16.msra.mxu1 %v2818_v9 }
 0x2d1   :  { %2452 = vmatprep.subr.bf16.mxu1 %v2733_v8 }
 0x39e   :  { %v303_v33 = vpop.f32.mrb[4].mxu1 }
 0x39f   :  { %v308_v34 = vrot.slane %v303_v33, 6  ;;  %v2262_v35 = vpop.f32.mrb[5].mxu1 }
 0x3a1   :  { %v310_v36 = vadd.f32 %v308_v34, %v2843_v15 }
 0x3a3   :  { %2589 = vtanh.f32 %v310_v36  ;;  %v2080_v38 = vmul.f32 -1.442695, %v310_v36 }
 0x3a5   :  { %2591 = vpow2.f32 %v2080_v38 }
 0x3ad   :  { %v2590_v37 = vpop.eup %2589 }
 0x3ae   :  { %323 = vrot.lane.b32.xlu0 %v2590_v37, %s2736_s22 }
 0x3af   :  { %v2592_v39 = vpop.eup %2591 }
 0x3b0   :  { %v314_v40 = vadd.f32 1.0, %v2592_v39 }
 0x3b2   :  { %2593 = vrcp.f32 %v314_v40 }
 0x3bc   :  { %v2594_v41 = vpop.eup %2593 }
 0x3bd   :  { %v321_v45 = vmul.f32 %v2594_v41, %v319_v44 }
 0x420   :  { %v324_v42 = vpop.permute.xlu0 %323 }
 0x421   :  { %v326_v43 = vmul.f32 %v2594_v41, %v324_v42 }
 0x423   :  { %328 = vrot.lane.b32.xlu1 %v326_v43, %s2737_s3 }
 0x495   :  { %v329_v46 = vpop.permute.xlu1 %328 }
 0x496   :  { %v331_v47 = vadd.f32 %v329_v46, %v321_v45 }
 0x498   :  { %2595 = vtanh.f32 %v331_v47  ;;  %v426_v0 = vrot.slane %v331_v47, 6 }
 0x4a2   :  { %v2596_v48 = vpop.eup %2595 }
 0x4a3   :  { %334 = vrot.lane.b32.xlu0 %v2596_v48, %s2736_s22 }
 0x515   :  { %v335_v49 = vpop.permute.xlu0 %334 }
 0x516   :  { %v337_v50 = vmul.f32 %v2594_v41, %v335_v49 }
 0x518   :  { %v339_v51 = vrot.slane %v337_v50, 2  ;;  %v977_v11 = vsel %vm976_vm4, %v2849_v31, %v337_v50 }
 0x51a   :  { %340 = vrot.lane.b32.xlu1 %v339_v51, %s2737_s3 }
 0x58c   :  { %v341_v52 = vpop.permute.xlu1 %340 }
 0x58d   :  { %2272 = vmatmul.mubr.msk.f32.vlgmr.msra.gmra.mrb[6].mxu1 %vm133_vm3, %v341_v52 }
 0x58e   :  { %2454 = vmatpush3.bf16.msra.mxu1 %v2810_v6  ;;  %2293 = vmatprep.mubr.msk.f32.mxu1 %vm2734_vm2, %v2735_v10 }
 0x58f   :  { %2455 = vmatprep.subr.bf16.mxu1 %v2733_v8 }
 0x592   :  { %2457 = vmatpush3.bf16.msra.mxu1 %v2818_v9 }
 0x593   :  { %2464 = vmatprep.subr.bf16.mxu1 %v2733_v8 }
 0x660   :  { %v410_v53 = vpop.f32.mrb[6].mxu1 }
 0x661   :  { %v415_v54 = vrot.slane %v410_v53, 4  ;;  %v2273_v55 = vpop.f32.mrb[7].mxu1 }
 0x663   :  { %v417_v56 = vadd.f32 %v415_v54, %v2843_v15 }
 0x665   :  { %2597 = vtanh.f32 %v417_v56  ;;  %v2082_v58 = vmul.f32 -1.442695, %v417_v56 }
 0x667   :  { %2599 = vpow2.f32 %v2082_v58 }
 0x66f   :  { %v2598_v57 = vpop.eup %2597 }
 0x670   :  { %430 = vrot.lane.b32.xlu0 %v2598_v57, %s2736_s22 }
 0x671   :  { %v2600_v59 = vpop.eup %2599 }
 0x672   :  { %v421_v60 = vadd.f32 1.0, %v2600_v59 }
 0x674   :  { %2601 = vrcp.f32 %v421_v60 }
 0x67e   :  { %v2602_v61 = vpop.eup %2601 }
 0x67f   :  { %v428_v1 = vmul.f32 %v2602_v61, %v426_v0 }
 0x6e2   :  { %v431_v62 = vpop.permute.xlu0 %430 }
 0x6e3   :  { %v433_v63 = vmul.f32 %v2602_v61, %v431_v62 }
 0x6e5   :  { %435 = vrot.lane.b32.xlu1 %v433_v63, %s2737_s3 }
 0x757   :  { %v436_v2 = vpop.permute.xlu1 %435 }
 0x758   :  { %v438_v3 = vadd.f32 %v436_v2, %v428_v1 }
 0x75a   :  { %2603 = vtanh.f32 %v438_v3  ;;  %v533_v28 = vrot.slane %v438_v3, 6 }
 0x764   :  { %v2604_v4 = vpop.eup %2603 }
 0x765   :  { %441 = vrot.lane.b32.xlu0 %v2604_v4, %s2736_s22 }
 0x7d7   :  { %v442_v5 = vpop.permute.xlu0 %441 }
 0x7d8   :  { %v444_v7 = vmul.f32 %v2602_v61, %v442_v5 }
 0x7da   :  { %v446_v12 = vrot.slane %v444_v7, 4  ;;  %v978_v14 = vsel %vm54_vm0, %v977_v11, %v444_v7 }
 0x7dc   :  { %447 = vrot.lane.b32.xlu1 %v446_v12, %s2737_s3 }
 0x84e   :  { %v448_v16 = vpop.permute.xlu1 %447 }
 0x84f   :  { %2283 = vmatmul.mubr.msk.f32.vlgmr.msra.gmra.mrb[0].mxu0 %vm133_vm3, %v448_v16 }
 0x850   :  { %2460 = vmatpush3.bf16.msra.mxu0 %v2810_v6  ;;  %2304 = vmatprep.mubr.msk.f32.mxu0 %vm2734_vm2, %v2735_v10 }
 0x851   :  { %2461 = vmatprep.subr.bf16.mxu0 %v2733_v8 }
 0x854   :  { %2463 = vmatpush3.bf16.msra.mxu0 %v2818_v9 }
 0x855   :  { %2470 = vmatprep.subr.bf16.mxu0 %v2733_v8 }
 0x922   :  { %v517_v17 = vpop.f32.mrb[0].mxu0 }
 0x923   :  { %v522_v18 = vrot.slane %v517_v17, 2  ;;  %v2284_v19 = vpop.f32.mrb[1].mxu0 }
 0x925   :  { %v524_v20 = vadd.f32 %v522_v18, %v2843_v15 }
 0x927   :  { %2605 = vtanh.f32 %v524_v20  ;;  %v2084_v22 = vmul.f32 -1.442695, %v524_v20 }
 0x929   :  { %2607 = vpow2.f32 %v2084_v22 }
 0x931   :  { %v2606_v21 = vpop.eup %2605 }
 0x932   :  { %537 = vrot.lane.b32.xlu0 %v2606_v21, %s2736_s22 }
 0x933   :  { %v2608_v23 = vpop.eup %2607 }
 0x934   :  { %v528_v24 = vadd.f32 1.0, %v2608_v23 }
 0x936   :  { %2609 = vrcp.f32 %v528_v24 }
 0x940   :  { %v2610_v25 = vpop.eup %2609 }
 0x941   :  { %v535_v29 = vmul.f32 %v2610_v25, %v533_v28 }
 0x9a4   :  { %v538_v26 = vpop.permute.xlu0 %537 }
 0x9a5   :  { %v540_v27 = vmul.f32 %v2610_v25, %v538_v26 }
 0x9a7   :  { %542 = vrot.lane.b32.xlu1 %v540_v27, %s2737_s3 }
 0xa19   :  { %v543_v30 = vpop.permute.xlu1 %542 }
 0xa1a   :  { %v545_v31 = vadd.f32 %v543_v30, %v535_v29 }
 0xa1c   :  { %2611 = vtanh.f32 %v545_v31  ;;  %v637_v47 = vrot.slane %v545_v31, 6 }
 0xa26   :  { %v2612_v15 = vpop.eup %2611 }
 0xa27   :  { %548 = vrot.lane.b32.xlu0 %v2612_v15, %s2736_s22 }
 0xa99   :  { %v549_v32 = vpop.permute.xlu0 %548 }
 0xa9a   :  { %v551_v33 = vmul.f32 %v2610_v25, %v549_v32 }
 0xa9c   :  { %v553_v34 = vrot.slane %v551_v33, 6  ;;  %v2892_v35 = vsel %vm979_vm5, %v978_v14, %v551_v33 }
 0xa9e   :  { %554 = vrot.lane.b32.xlu1 %v553_v34, %s2737_s3 }
 0xb10   :  { %v555_v36 = vpop.permute.xlu1 %554 }
 0xb11   :  { %2294 = vmatmul.mubr.msk.f32.vlgmr.msra.gmra.mrb[8].mxu1 %vm133_vm3, %v555_v36 }
 0xb12   :  { %2466 = vmatpush3.bf16.msra.mxu1 %v2810_v6  ;;  %2315 = vmatprep.mubr.msk.f32.mxu1 %vm2734_vm2, %v2735_v10 }
 0xb13   :  { %2467 = vmatprep.subr.bf16.mxu1 %v2733_v8 }
 0xb16   :  { %2469 = vmatpush3.bf16.msra.mxu1 %v2818_v9 }
 0xbe4   :  { %v624_v37 = vpop.f32.mrb[8].mxu1 }
 0xbe5   :  { %v628_v38 = vadd.f32 %v624_v37, %v2841_v13  ;;  %v2295_v39 = vpop.f32.mrb[9].mxu1 }
 0xbe7   :  { %2613 = vtanh.f32 %v628_v38  ;;  %v2086_v41 = vmul.f32 -1.442695, %v628_v38 }
 0xbe9   :  { %2615 = vpow2.f32 %v2086_v41 }
 0xbf1   :  { %v2614_v40 = vpop.eup %2613 }
 0xbf2   :  { %641 = vrot.lane.b32.xlu0 %v2614_v40, %s2736_s22 }
 0xbf3   :  { %v2616_v42 = vpop.eup %2615 }
 0xbf4   :  { %v632_v43 = vadd.f32 1.0, %v2616_v42 }
 0xbf6   :  { %2617 = vrcp.f32 %v632_v43 }
 0xc00   :  { %v2618_v44 = vpop.eup %2617 }
 0xc01   :  { %v639_v48 = vmul.f32 %v2618_v44, %v637_v47 }
 0xc64   :  { %v642_v45 = vpop.permute.xlu0 %641 }
 0xc65   :  { %v644_v46 = vmul.f32 %v2618_v44, %v642_v45 }
 0xc67   :  { %646 = vrot.lane.b32.xlu1 %v644_v46, %s2737_s3 }
 0xcd9   :  { %v647_v49 = vpop.permute.xlu1 %646 }
 0xcda   :  { %v649_v50 = vadd.f32 %v647_v49, %v639_v48 }
 0xcdc   :  { %2619 = vtanh.f32 %v649_v50 }
 0xce6   :  { %v2620_v51 = vpop.eup %2619 }
 0xce7   :  { %652 = vrot.lane.b32.xlu0 %v2620_v51, %s2736_s22 }
 0xd59   :  { %v653_v52 = vpop.permute.xlu0 %652 }
 0xd5a   :  { %v2905_v53 = vmul.f32 %v2618_v44, %v653_v52  ;;  %v984_v52 = vld [vmem:[%s3233_s4] sm:$0xff] }
 0xd5c   :  { %657 = vrot.lane.b32.xlu1 %v2905_v53, %s2737_s3 }
 0xdce   :  { %v658_v54 = vpop.permute.xlu1 %657 }
 0xdcf   :  { %2305 = vmatmul.mubr.msk.f32.vlgmr.msra.gmra.mrb[2].mxu0 %vm133_vm3, %v658_v54  ;;  %v988_v54 = vld [vmem:[%s3234_s5] sm:$0xff] }
 0xdd0   :  { %2472 = vmatpush3.bf16.msra.mxu0 %v2810_v6  ;;  %2326 = vmatprep.mubr.msk.f32.mxu0 %vm2734_vm2, %v2735_v10 }
 0xdd1   :  { %2473 = vmatprep.subr.bf16.mxu0 %v2733_v8 }
 0xdd4   :  { %2475 = vmatpush3.bf16.msra.mxu0 %v2818_v9  ;;  %v743_v9 = vrot.slane %v649_v50, 6 }
 0xdd5   :  { %2484 = vmatprep.subr.bf16.mxu0 %v2733_v8 }
 0xea2   :  { %v727_v55 = vpop.f32.mrb[2].mxu0 }
 0xea3   :  { %v732_v56 = vrot.slane %v727_v55, 6  ;;  %v2306_v57 = vpop.f32.mrb[3].mxu0  ;;  %v989_v55 = vld [vmem:[%s3234_s5 + $0x8] sm:$0xff] }
 0xea4   :  { %v987_v57 = vld [vmem:[%s3233_s4 + $0x18] sm:$0xff] }
 0xea5   :  { %v734_v58 = vadd.f32 %v732_v56, %v2841_v13  ;;  %v986_v56 = vld [vmem:[%s3233_s4 + $0x10] sm:$0xff] }
 0xea7   :  { %2621 = vtanh.f32 %v734_v58  ;;  %v2088_v60 = vmul.f32 -1.442695, %v734_v58  ;;  %v2957_v58 = vpack.c.bf16 %v989_v55, %v988_v54 }
 0xea9   :  { %2623 = vpow2.f32 %v2088_v60  ;;  %v990_v60 = vld [vmem:[%s3234_s5 + $0x10] sm:$0xff] }
 0xeb1   :  { %v2622_v59 = vpop.eup %2621 }
 0xeb2   :  { %747 = vrot.lane.b32.xlu0 %v2622_v59, %s2736_s22  ;;  %v2480_v59 = vpack.c.bf16 %v987_v57, %v986_v56 }
 0xeb3   :  { %v2624_v6 = vpop.eup %2623 }
 0xeb4   :  { %v738_v61 = vadd.f32 1.0, %v2624_v6  ;;  %v991_v6 = vld [vmem:[%s3234_s5 + $0x18] sm:$0xff] }
 0xeb6   :  { %2625 = vrcp.f32 %v738_v61  ;;  %v2966_v61 = vpack.c.bf16 %v991_v6, %v990_v60 }
 0xec0   :  { %v2626_v62 = vpop.eup %2625 }
 0xec1   :  { %v745_v1 = vmul.f32 %v2626_v62, %v743_v9 }
 0xf24   :  { %v748_v63 = vpop.permute.xlu0 %747 }
 0xf25   :  { %v750_v0 = vmul.f32 %v2626_v62, %v748_v63 }
 0xf27   :  { %752 = vrot.lane.b32.xlu1 %v750_v0, %s2737_s3 }
 0xf99   :  { %v753_v2 = vpop.permute.xlu1 %752 }
 0xf9a   :  { %v755_v3 = vadd.f32 %v753_v2, %v745_v1 }
 0xf9c   :  { %2627 = vtanh.f32 %v755_v3  ;;  %v850_v26 = vrot.slane %v755_v3, 6 }
 0xfa6   :  { %v2628_v4 = vpop.eup %2627 }
 0xfa7   :  { %758 = vrot.lane.b32.xlu0 %v2628_v4, %s2736_s22  ;;  %v2093_v4 = vld [vmem:[%s3235_s6] ss:$0 sm:$0xff] }
0x1019   :  { %v759_v5 = vpop.permute.xlu0 %758 }
0x101a   :  { %v761_v7 = vmul.f32 %v2626_v62, %v759_v5 }
0x101c   :  { %v763_v11 = vrot.slane %v761_v7, 2  ;;  %v981_v32 = vsel %vm976_vm4, %v2905_v53, %v761_v7  ;;  %v985_v53 = vld [vmem:[%s3233_s4 + $0x8] sm:$0xff] }
0x101e   :  { %764 = vrot.lane.b32.xlu1 %v763_v11, %s2737_s3 }
0x1090   :  { %v765_v12 = vpop.permute.xlu1 %764 }
0x1091   :  { %2316 = vmatmul.mubr.msk.f32.vlgmr.msra.gmra.mrb[10].mxu1 %vm133_vm3, %v765_v12 }
0x1164   :  { %v834_v14 = vpop.f32.mrb[10].mxu1 }
0x1165   :  { %v839_v16 = vrot.slane %v834_v14, 4  ;;  %v2317_v17 = vpop.f32.mrb[11].mxu1 }
0x1167   :  { %v841_v18 = vadd.f32 %v839_v16, %v2841_v13 }
0x1169   :  { %2629 = vtanh.f32 %v841_v18  ;;  %v2090_v20 = vmul.f32 -1.442695, %v841_v18 }
0x116b   :  { %2631 = vpow2.f32 %v2090_v20 }
0x1173   :  { %v2630_v19 = vpop.eup %2629 }
0x1174   :  { %854 = vrot.lane.b32.xlu0 %v2630_v19, %s2736_s22 }
0x1175   :  { %v2632_v21 = vpop.eup %2631 }
0x1176   :  { %v845_v22 = vadd.f32 1.0, %v2632_v21 }
0x1178   :  { %2633 = vrcp.f32 %v845_v22 }
0x1182   :  { %v2634_v23 = vpop.eup %2633 }
0x1183   :  { %v852_v27 = vmul.f32 %v2634_v23, %v850_v26 }
0x11e6   :  { %v855_v24 = vpop.permute.xlu0 %854 }
0x11e7   :  { %v857_v25 = vmul.f32 %v2634_v23, %v855_v24 }
0x11e9   :  { %859 = vrot.lane.b32.xlu1 %v857_v25, %s2737_s3 }
0x125b   :  { %v860_v28 = vpop.permute.xlu1 %859 }
0x125c   :  { %v862_v29 = vadd.f32 %v860_v28, %v852_v27 }
0x125e   :  { %2635 = vtanh.f32 %v862_v29  ;;  %v957_v48 = vrot.slane %v862_v29, 6 }
0x1268   :  { %v2636_v30 = vpop.eup %2635 }
0x1269   :  { %865 = vrot.lane.b32.xlu0 %v2636_v30, %s2736_s22 }
0x12db   :  { %v866_v31 = vpop.permute.xlu0 %865 }
0x12dc   :  { %v868_v15 = vmul.f32 %v2634_v23, %v866_v31 }
0x12de   :  { %v870_v33 = vrot.slane %v868_v15, 4  ;;  %v982_v34 = vsel %vm54_vm0, %v981_v32, %v868_v15 }
0x12e0   :  { %871 = vrot.lane.b32.xlu1 %v870_v33, %s2737_s3 }
0x1352   :  { %v872_v36 = vpop.permute.xlu1 %871 }
0x1353   :  { %2327 = vmatmul.mubr.msk.f32.vlgmr.msra.gmra.mrb[4].mxu0 %vm133_vm3, %v872_v36 }
0x1354   :  { %2348 = vmatprep.mubr.msk.f32.mxu0 %vm2734_vm2, %v2735_v10  ;;  %2486 = vmatpush3.bf16.msra.mxu0 %v2957_v58 }
0x1355   :  { %2487 = vmatprep.subr.bf16.mxu0 %v2733_v8 }
0x1358   :  { %2489 = vmatpush3.bf16.msra.mxu0 %v2966_v61 }
0x1359   :  { %2496 = vmatprep.subr.bf16.mxu0 %v2733_v8 }
0x135b   :  { %2349 = vmatmul.mubr.f32.vlgmr.msra.gmra.mrb[6].mxu0 %v2735_v10 }
0x135c   :  { %2498 = vmatpush3.bf16.msra.mxu0 %v2957_v58  ;;  %2370 = vmatprep.mubr.msk.f32.mxu0 %vm2734_vm2, %v2735_v10 }
0x135d   :  { %2499 = vmatprep.subr.bf16.mxu0 %v2733_v8 }
0x1360   :  { %2501 = vmatpush3.bf16.msra.mxu0 %v2966_v61 }
0x1361   :  { %2508 = vmatprep.subr.bf16.mxu0 %v2733_v8 }
0x1426   :  { %v941_v37 = vpop.f32.mrb[4].mxu0 }
0x1427   :  { %v946_v38 = vrot.slane %v941_v37, 2  ;;  %v2328_v39 = vpop.f32.mrb[5].mxu0 }
0x1429   :  { %v948_v40 = vadd.f32 %v946_v38, %v2841_v13 }
0x142b   :  { %2637 = vtanh.f32 %v948_v40  ;;  %v2092_v42 = vmul.f32 -1.442695, %v948_v40 }
0x142d   :  { %2639 = vpow2.f32 %v2092_v42 }
0x142e   :  { %v1150_v2 = vpop.f32.mrb[6].mxu0 }
0x142f   :  { %v2350_v3 = vpop.f32.mrb[7].mxu0 }
0x1435   :  { %v2638_v41 = vpop.eup %2637 }
0x1436   :  { %961 = vrot.lane.b32.xlu0 %v2638_v41, %s2736_s22 }
0x1437   :  { %v2640_v43 = vpop.eup %2639 }
0x1438   :  { %v952_v44 = vadd.f32 1.0, %v2640_v43 }
0x143a   :  { %2641 = vrcp.f32 %v952_v44 }
0x1444   :  { %v2642_v45 = vpop.eup %2641 }
0x1445   :  { %v959_v49 = vmul.f32 %v2642_v45, %v957_v48 }
0x14a8   :  { %v962_v46 = vpop.permute.xlu0 %961 }
0x14a9   :  { %v964_v47 = vmul.f32 %v2642_v45, %v962_v46 }
0x14ab   :  { %966 = vrot.lane.b32.xlu1 %v964_v47, %s2737_s3 }
0x14af   :  { %1001 = vrot.lane.b32.xlu1 %v2892_v35, %s2737_s3  ;;  %v2476_v35 = vpack.c.bf16 %v985_v53, %v984_v52 }
0x14b1   :  { %2477 = vmatprep.subr.bf16.mxu1 %v2476_v35 }
0x14b2   :  { %2479 = vmatpush3.bf16.msra.mxu1 %v2476_v35 }
0x14b3   :  { %2481 = vmatprep.subr.bf16.mxu1 %v2480_v59 }
0x14b6   :  { %2483 = vmatpush3.bf16.msra.mxu1 %v2480_v59 }
0x14b7   :  { %2490 = vmatprep.subr.bf16.mxu1 %v2733_v8 }
0x151d   :  { %v967_v13 = vpop.permute.xlu1 %966 }
0x151e   :  { %v969_v50 = vadd.f32 %v967_v13, %v959_v49 }
0x1520   :  { %2643 = vtanh.f32 %v969_v50 }
0x1521   :  { %v1002_v51 = vpop.permute.xlu1 %1001 }
0x1522   :  { %2337 = vmatprep.mubr.msk.f32.mxu1 %vm133_vm3, %v1002_v51 }
0x152a   :  { %v2644_v62 = vpop.eup %2643 }
0x152b   :  { %972 = vrot.lane.b32.xlu0 %v2644_v62, %s2736_s22 }
0x159d   :  { %v973_v63 = vpop.permute.xlu0 %972 }
0x159e   :  { %v975_v0 = vmul.f32 %v2642_v45, %v973_v63 }
0x15a0   :  { %v983_v9 = vsel %vm979_vm5, %v982_v34, %v975_v0 }
0x15a1   :  { %1003 = vrot.lane.b32.xlu0 %v983_v9, %s2737_s3 }
0x1613   :  { %v1004_v1 = vpop.permute.xlu0 %1003 }
0x1614   :  { %2338 = vmatmul.mubr.msk.f32.vlgmr.msra.gmra.mrb[12].mxu1 %vm133_vm3, %v1004_v1 }
0x1615   :  { %2492 = vmatpush3.bf16.msra.mxu1 %v2957_v58  ;;  %2359 = vmatprep.mubr.msk.f32.mxu1 %vm2734_vm2, %v2735_v10 }
0x1616   :  { %2493 = vmatprep.subr.bf16.mxu1 %v2733_v8 }
0x1619   :  { %2495 = vmatpush3.bf16.msra.mxu1 %v2966_v61 }
0x161a   :  { %2502 = vmatprep.subr.bf16.mxu1 %v2733_v8 }
0x16e7   :  { %v2339_v5 = vpop.f32.mrb[12].mxu1 }
0x16e8   :  { %v2992_v7 = vadd.f32 %v2339_v5, %v2093_v4  ;;  %v1075_v11 = vpop.f32.mrb[13].mxu1 }
0x16e9   :  { %v2994_v12 = vadd.f32 %v2093_v4, %v1075_v11 }
0x16eb   :  { %v1154_v14 = vadd.f32 %v1150_v2, %v2994_v12 }
0x16ed   :  { %2645 = vtanh.f32 %v1154_v14  ;;  %v2096_v17 = vmul.f32 -1.442695, %v1154_v14 }
0x16ef   :  { %2647 = vpow2.f32 %v2096_v17 }
0x16f7   :  { %v2646_v16 = vpop.eup %2645 }
0x16f8   :  { %1164 = vrot.lane.b32.xlu1 %v2646_v16, %s2736_s22 }
0x16f9   :  { %v2648_v18 = vpop.eup %2647 }
0x16fa   :  { %v1158_v19 = vadd.f32 1.0, %v2648_v18 }
0x16fc   :  { %2649 = vrcp.f32 %v1158_v19 }
0x1706   :  { %v2650_v20 = vpop.eup %2649 }
0x1707   :  { %v1162_v23 = vmul.f32 0.0, %v2650_v20 }
0x176a   :  { %v1165_v21 = vpop.permute.xlu1 %1164 }
0x176b   :  { %v1167_v22 = vmul.f32 %v2650_v20, %v1165_v21 }
0x176d   :  { %1169 = vrot.lane.b32.xlu0 %v1167_v22, %s2737_s3 }
0x17df   :  { %v1170_v24 = vpop.permute.xlu0 %1169 }
0x17e0   :  { %v1172_v25 = vadd.f32 %v1170_v24, %v1162_v23 }
0x17e2   :  { %2651 = vtanh.f32 %v1172_v25  ;;  %v1266_v41 = vrot.slane %v1172_v25, 6 }
0x17ec   :  { %v2652_v26 = vpop.eup %2651 }
0x17ed   :  { %1175 = vrot.lane.b32.xlu1 %v2652_v26, %s2736_s22 }
0x185f   :  { %v1176_v27 = vpop.permute.xlu1 %1175 }
0x1860   :  { %v1178_v28 = vmul.f32 %v2650_v20, %v1176_v27 }
0x1862   :  { %1180 = vrot.lane.b32.xlu0 %v1178_v28, %s2737_s3 }
0x18d4   :  { %v3001_v29 = vpop.permute.xlu0 %1180 }
0x18d5   :  { %2360 = vmatmul.mubr.msk.f32.vlgmr.msra.gmra.mrb[14].mxu1 %vm133_vm3, %v3001_v29 }
0x18d6   :  { %2504 = vmatpush3.bf16.msra.mxu1 %v2957_v58  ;;  %2381 = vmatprep.mubr.msk.f32.mxu1 %vm2734_vm2, %v2735_v10 }
0x18d7   :  { %2505 = vmatprep.subr.bf16.mxu1 %v2733_v8 }
0x18da   :  { %2507 = vmatpush3.bf16.msra.mxu1 %v2966_v61 }
0x18db   :  { %2514 = vmatprep.subr.bf16.mxu1 %v2733_v8 }
0x19a8   :  { %v1250_v30 = vpop.f32.mrb[14].mxu1 }
0x19a9   :  { %v1255_v31 = vrot.slane %v1250_v30, 6  ;;  %v2361_v15 = vpop.f32.mrb[15].mxu1 }
0x19ab   :  { %v1257_v32 = vadd.f32 %v1255_v31, %v2994_v12 }
0x19ad   :  { %2653 = vtanh.f32 %v1257_v32  ;;  %v2098_v34 = vmul.f32 -1.442695, %v1257_v32 }
0x19af   :  { %2655 = vpow2.f32 %v2098_v34 }
0x19b7   :  { %v2654_v33 = vpop.eup %2653 }
0x19b8   :  { %1270 = vrot.lane.b32.xlu1 %v2654_v33, %s2736_s22 }
0x19b9   :  { %v2656_v36 = vpop.eup %2655 }
0x19ba   :  { %v1261_v37 = vadd.f32 1.0, %v2656_v36 }
0x19bc   :  { %2657 = vrcp.f32 %v1261_v37 }
0x19c6   :  { %v2658_v38 = vpop.eup %2657 }
0x19c7   :  { %v1268_v42 = vmul.f32 %v2658_v38, %v1266_v41 }
0x1a2a   :  { %v1271_v39 = vpop.permute.xlu1 %1270 }
0x1a2b   :  { %v1273_v40 = vmul.f32 %v2658_v38, %v1271_v39 }
0x1a2d   :  { %1275 = vrot.lane.b32.xlu0 %v1273_v40, %s2737_s3 }
0x1a9f   :  { %v1276_v43 = vpop.permute.xlu0 %1275 }
0x1aa0   :  { %v1278_v44 = vadd.f32 %v1276_v43, %v1268_v42 }
0x1aa2   :  { %2659 = vtanh.f32 %v1278_v44  ;;  %v1373_v60 = vrot.slane %v1278_v44, 6 }
0x1aac   :  { %v2660_v45 = vpop.eup %2659 }
0x1aad   :  { %1281 = vrot.lane.b32.xlu1 %v2660_v45, %s2736_s22 }
0x1b1f   :  { %v1282_v46 = vpop.permute.xlu1 %1281 }
0x1b20   :  { %v3015_v47 = vmul.f32 %v2658_v38, %v1282_v46 }
0x1b22   :  { %v1286_v48 = vrot.slane %v3015_v47, 2  ;;  %v1950_v47 = vld [vmem:[%s3236_s7 + $0x8] sm:$0xff] }
0x1b24   :  { %1287 = vrot.lane.b32.xlu0 %v1286_v48, %s2737_s3 }
0x1b96   :  { %v1288_v49 = vpop.permute.xlu0 %1287 }
0x1b97   :  { %2371 = vmatmul.mubr.msk.f32.vlgmr.msra.gmra.mrb[8].mxu0 %vm133_vm3, %v1288_v49 }
0x1b98   :  { %2510 = vmatpush3.bf16.msra.mxu0 %v2957_v58  ;;  %2392 = vmatprep.mubr.msk.f32.mxu0 %vm2734_vm2, %v2735_v10 }
0x1b99   :  { %2511 = vmatprep.subr.bf16.mxu0 %v2733_v8 }
0x1b9c   :  { %2513 = vmatpush3.bf16.msra.mxu0 %v2966_v61 }
0x1b9d   :  { %2520 = vmatprep.subr.bf16.mxu0 %v2733_v8 }
0x1c6a   :  { %v1357_v13 = vpop.f32.mrb[8].mxu0 }
0x1c6b   :  { %v1362_v50 = vrot.slane %v1357_v13, 4  ;;  %v2372_v51 = vpop.f32.mrb[9].mxu0 }
0x1c6d   :  { %v1364_v52 = vadd.f32 %v1362_v50, %v2994_v12 }
0x1c6f   :  { %2661 = vtanh.f32 %v1364_v52  ;;  %v2100_v54 = vmul.f32 -1.442695, %v1364_v52 }
0x1c71   :  { %2663 = vpow2.f32 %v2100_v54 }
0x1c79   :  { %v2662_v53 = vpop.eup %2661 }
0x1c7a   :  { %1377 = vrot.lane.b32.xlu1 %v2662_v53, %s2736_s22 }
0x1c7b   :  { %v2664_v35 = vpop.eup %2663 }
0x1c7c   :  { %v1368_v55 = vadd.f32 1.0, %v2664_v35 }
0x1c7e   :  { %2665 = vrcp.f32 %v1368_v55 }
0x1c88   :  { %v2666_v56 = vpop.eup %2665 }
0x1c89   :  { %v1375_v6 = vmul.f32 %v2666_v56, %v1373_v60 }
0x1cec   :  { %v1378_v57 = vpop.permute.xlu1 %1377 }
0x1ced   :  { %v1380_v59 = vmul.f32 %v2666_v56, %v1378_v57 }
0x1cef   :  { %1382 = vrot.lane.b32.xlu0 %v1380_v59, %s2737_s3 }
0x1d61   :  { %v1383_v62 = vpop.permute.xlu0 %1382 }
0x1d62   :  { %v1385_v63 = vadd.f32 %v1383_v62, %v1375_v6 }
0x1d64   :  { %2667 = vtanh.f32 %v1385_v63  ;;  %v1480_v23 = vrot.slane %v1385_v63, 6 }
0x1d6e   :  { %v2668_v0 = vpop.eup %2667 }
0x1d6f   :  { %1388 = vrot.lane.b32.xlu1 %v2668_v0, %s2736_s22 }
0x1de1   :  { %v1389_v9 = vpop.permute.xlu1 %1388 }
0x1de2   :  { %v3032_v1 = vmul.f32 %v2666_v56, %v1389_v9 }
0x1de4   :  { %v1393_v2 = vrot.slane %v3032_v1, 4 }
0x1de6   :  { %1394 = vrot.lane.b32.xlu0 %v1393_v2, %s2737_s3 }
0x1e58   :  { %v1395_v3 = vpop.permute.xlu0 %1394 }
0x1e59   :  { %2382 = vmatmul.mubr.msk.f32.vlgmr.msra.gmra.mrb[16].mxu1 %vm133_vm3, %v1395_v3 }
0x1e5a   :  { %2516 = vmatpush3.bf16.msra.mxu1 %v2957_v58  ;;  %2403 = vmatprep.mubr.msk.f32.mxu1 %vm2734_vm2, %v2735_v10 }
0x1e5b   :  { %2517 = vmatprep.subr.bf16.mxu1 %v2733_v8 }
0x1e5e   :  { %2519 = vmatpush3.bf16.msra.mxu1 %v2966_v61 }
0x1e5f   :  { %2526 = vmatprep.subr.bf16.mxu1 %v2733_v8 }
0x1f2c   :  { %v1464_v4 = vpop.f32.mrb[16].mxu1 }
0x1f2d   :  { %v1469_v5 = vrot.slane %v1464_v4, 2  ;;  %v2383_v11 = vpop.f32.mrb[17].mxu1 }
0x1f2f   :  { %v1471_v14 = vadd.f32 %v1469_v5, %v2994_v12 }
0x1f31   :  { %2669 = vtanh.f32 %v1471_v14  ;;  %v2102_v17 = vmul.f32 -1.442695, %v1471_v14 }
0x1f33   :  { %2671 = vpow2.f32 %v2102_v17 }
0x1f3b   :  { %v2670_v16 = vpop.eup %2669 }
0x1f3c   :  { %1484 = vrot.lane.b32.xlu1 %v2670_v16, %s2736_s22 }
0x1f3d   :  { %v2672_v18 = vpop.eup %2671 }
0x1f3e   :  { %v1475_v19 = vadd.f32 1.0, %v2672_v18 }
0x1f40   :  { %2673 = vrcp.f32 %v1475_v19 }
0x1f4a   :  { %v2674_v20 = vpop.eup %2673 }
0x1f4b   :  { %v1482_v24 = vmul.f32 %v2674_v20, %v1480_v23 }
0x1fae   :  { %v1485_v21 = vpop.permute.xlu1 %1484 }
0x1faf   :  { %v1487_v22 = vmul.f32 %v2674_v20, %v1485_v21 }
0x1fb1   :  { %1489 = vrot.lane.b32.xlu0 %v1487_v22, %s2737_s3 }
0x2023   :  { %v1490_v25 = vpop.permute.xlu0 %1489 }
0x2024   :  { %v1492_v26 = vadd.f32 %v1490_v25, %v1482_v24 }
0x2026   :  { %2675 = vtanh.f32 %v1492_v26  ;;  %v1584_v42 = vrot.slane %v1492_v26, 6 }
0x2030   :  { %v2676_v12 = vpop.eup %2675 }
0x2031   :  { %1495 = vrot.lane.b32.xlu1 %v2676_v12, %s2736_s22 }
0x20a3   :  { %v1496_v27 = vpop.permute.xlu1 %1495 }
0x20a4   :  { %v3049_v28 = vmul.f32 %v2674_v20, %v1496_v27 }
0x20a6   :  { %v1500_v30 = vrot.slane %v3049_v28, 6 }
0x20a8   :  { %1501 = vrot.lane.b32.xlu0 %v1500_v30, %s2737_s3 }
0x211a   :  { %v1502_v31 = vpop.permute.xlu0 %1501 }
0x211b   :  { %2393 = vmatmul.mubr.msk.f32.vlgmr.msra.gmra.mrb[10].mxu0 %vm133_vm3, %v1502_v31 }
0x211c   :  { %2522 = vmatpush3.bf16.msra.mxu0 %v2957_v58  ;;  %2414 = vmatprep.mubr.msk.f32.mxu0 %vm2734_vm2, %v2735_v10 }
0x211d   :  { %2523 = vmatprep.subr.bf16.mxu0 %v2733_v8 }
0x2120   :  { %2525 = vmatpush3.bf16.msra.mxu0 %v2966_v61 }
0x21ee   :  { %v1571_v15 = vpop.f32.mrb[10].mxu0 }
0x21ef   :  { %v1575_v32 = vadd.f32 %v1571_v15, %v2992_v7  ;;  %v2394_v33 = vpop.f32.mrb[11].mxu0 }
0x21f1   :  { %2677 = vtanh.f32 %v1575_v32  ;;  %v2104_v36 = vmul.f32 -1.442695, %v1575_v32 }
0x21f3   :  { %2679 = vpow2.f32 %v2104_v36 }
0x21fb   :  { %v2678_v34 = vpop.eup %2677 }
0x21fc   :  { %1588 = vrot.lane.b32.xlu1 %v2678_v34, %s2736_s22 }
0x21fd   :  { %v2680_v37 = vpop.eup %2679 }
0x21fe   :  { %v1579_v38 = vadd.f32 1.0, %v2680_v37 }
0x2200   :  { %2681 = vrcp.f32 %v1579_v38 }
0x220a   :  { %v2682_v39 = vpop.eup %2681 }
0x220b   :  { %v1586_v43 = vmul.f32 %v2682_v39, %v1584_v42 }
0x226e   :  { %v1589_v40 = vpop.permute.xlu1 %1588 }
0x226f   :  { %v1591_v41 = vmul.f32 %v2682_v39, %v1589_v40 }
0x2271   :  { %1593 = vrot.lane.b32.xlu0 %v1591_v41, %s2737_s3 }
0x22e3   :  { %v1594_v44 = vpop.permute.xlu0 %1593 }
0x22e4   :  { %v1596_v45 = vadd.f32 %v1594_v44, %v1586_v43 }
0x22e6   :  { %2683 = vtanh.f32 %v1596_v45 }
0x22f0   :  { %v2684_v46 = vpop.eup %2683 }
0x22f1   :  { %1599 = vrot.lane.b32.xlu1 %v2684_v46, %s2736_s22  ;;  %v1966_v46 = vld [vmem:[%s3236_s7 + $0x88] sm:$0xff] }
0x2363   :  { %v1600_v49 = vpop.permute.xlu1 %1599 }
0x2364   :  { %v1602_v13 = vmul.f32 %v2682_v39, %v1600_v49  ;;  %v1949_v49 = vld [vmem:[%s3236_s7] sm:$0xff] }
0x2366   :  { %1604 = vrot.lane.b32.xlu0 %v1602_v13, %s2737_s3 }
0x23d8   :  { %v3066_v50 = vpop.permute.xlu0 %1604 }
0x23d9   :  { %2404 = vmatmul.mubr.msk.f32.vlgmr.msra.gmra.mrb[18].mxu1 %vm133_vm3, %v3066_v50 }
0x23da   :  { %2528 = vmatpush3.bf16.msra.mxu1 %v2957_v58  ;;  %2425 = vmatprep.mubr.msk.f32.mxu1 %vm2734_vm2, %v2735_v10 }
0x23db   :  { %2529 = vmatprep.subr.bf16.mxu1 %v2733_v8  ;;  %v1690_v8 = vrot.slane %v1596_v45, 6 }
0x23de   :  { %2531 = vmatpush3.bf16.msra.mxu1 %v2966_v61 }
0x24ac   :  { %v1674_v51 = vpop.f32.mrb[18].mxu1 }
0x24ad   :  { %v1679_v52 = vrot.slane %v1674_v51, 6  ;;  %v2405_v53 = vpop.f32.mrb[19].mxu1  ;;  %v1968_v51 = vld [vmem:[%s3236_s7 + $0x98] sm:$0xff] }
0x24af   :  { %v1681_v54 = vadd.f32 %v1679_v52, %v2992_v7  ;;  %v2534_v52 = vpack.c.bf16 %v1950_v47, %v1949_v49 }
0x24b1   :  { %2685 = vtanh.f32 %v1681_v54  ;;  %v2106_v55 = vmul.f32 -1.442695, %v1681_v54  ;;  %v1951_v54 = vld [vmem:[%s3236_s7 + $0x10] sm:$0xff] }
0x24b3   :  { %2687 = vpow2.f32 %v2106_v55  ;;  %v1969_v55 = vld [vmem:[%s3236_s7 + $0xa0] sm:$0xff] }
0x24bb   :  { %v2686_v35 = vpop.eup %2685 }
0x24bc   :  { %1694 = vrot.lane.b32.xlu1 %v2686_v35, %s2736_s22  ;;  %v1952_v35 = vld [vmem:[%s3236_s7 + $0x18] sm:$0xff] }
0x24bd   :  { %v2688_v56 = vpop.eup %2687 }
0x24be   :  { %v1685_v58 = vadd.f32 1.0, %v2688_v56  ;;  %v1970_v56 = vld [vmem:[%s3236_s7 + $0xa8] sm:$0xff] }
0x24c0   :  { %2689 = vrcp.f32 %v1685_v58  ;;  %v2538_v58 = vpack.c.bf16 %v1952_v35, %v1951_v54  ;;  %v2111_v35 = vld [vmem:[%s3237_s8] ss:$0 sm:$0xff] }
0x24ca   :  { %v2690_v57 = vpop.eup %2689 }
0x24cb   :  { %v1692_v61 = vmul.f32 %v2690_v57, %v1690_v8  ;;  %v1971_v8 = vld [vmem:[%s3236_s7 + $0xb0] sm:$0xff] }
0x252e   :  { %v1695_v10 = vpop.permute.xlu1 %1694 }
0x252f   :  { %v1697_v59 = vmul.f32 %v2690_v57, %v1695_v10  ;;  %v1953_v10 = vld [vmem:[%s3236_s7 + $0x20] sm:$0xff] }
0x2531   :  { %1699 = vrot.lane.b32.xlu0 %v1697_v59, %s2737_s3  ;;  %v1954_v59 = vld [vmem:[%s3236_s7 + $0x28] sm:$0xff] }
0x25a3   :  { %v1700_v60 = vpop.permute.xlu0 %1699 }
0x25a4   :  { %v1702_v6 = vadd.f32 %v1700_v60, %v1692_v61  ;;  %v1972_v61 = vld [vmem:[%s3236_s7 + $0xb8] sm:$0xff]  ;;  %v2542_v60 = vpack.c.bf16 %v1954_v59, %v1953_v10 }
0x25a6   :  { %2691 = vtanh.f32 %v1702_v6  ;;  %v1797_v23 = vrot.slane %v1702_v6, 6  ;;  %v2544_v6 = vpack.c.bf16 %v1972_v61, %v1971_v8 }
0x25b0   :  { %v2692_v62 = vpop.eup %2691 }
0x25b1   :  { %1705 = vrot.lane.b32.xlu1 %v2692_v62, %s2736_s22  ;;  %v1955_v62 = vld [vmem:[%s3236_s7 + $0x30] sm:$0xff] }
0x2623   :  { %v1706_v63 = vpop.permute.xlu1 %1705 }
0x2624   :  { %v1708_v0 = vmul.f32 %v2690_v57, %v1706_v63  ;;  %v2540_v57 = vpack.c.bf16 %v1970_v56, %v1969_v55  ;;  %v1956_v63 = vld [vmem:[%s3236_s7 + $0x38] sm:$0xff] }
0x2626   :  { %v1710_v9 = vrot.slane %v1708_v0, 2  ;;  %v1973_v0 = vld [vmem:[%s3236_s7 + $0xc0] sm:$0xff] }
0x2628   :  { %1711 = vrot.lane.b32.xlu0 %v1710_v9, %s2737_s3  ;;  %v2571_v45 = vpack.i.bf16 %v1286_v48, %v1710_v9  ;;  %v1967_v48 = vld [vmem:[%s3236_s7 + $0x90] sm:$0xff]  ;;  %v1974_v9 = vld [vmem:[%s3236_s7 + $0xc8] sm:$0xff] }
0x2629   :  { %v2536_v53 = vpack.c.bf16 %v1968_v51, %v1967_v48 }
0x269a   :  { %v1712_v3 = vpop.permute.xlu0 %1711 }
0x269b   :  { %2415 = vmatmul.mubr.msk.f32.vlgmr.msra.gmra.mrb[12].mxu0 %vm133_vm3, %v1712_v3  ;;  %v2546_v3 = vpack.c.bf16 %v1956_v63, %v1955_v62 }
0x276e   :  { %v1781_v4 = vpop.f32.mrb[12].mxu0 }
0x276f   :  { %v1786_v5 = vrot.slane %v1781_v4, 4  ;;  %v2416_v11 = vpop.f32.mrb[13].mxu0  ;;  %v2548_v4 = vpack.c.bf16 %v1974_v9, %v1973_v0 }
0x2770   :  { %v1958_v11 = vld [vmem:[%s3236_s7 + $0x48] sm:$0xff] }
0x2771   :  { %v1788_v14 = vadd.f32 %v1786_v5, %v2992_v7  ;;  %v1957_v5 = vld [vmem:[%s3236_s7 + $0x40] sm:$0xff] }
0x2773   :  { %2693 = vtanh.f32 %v1788_v14  ;;  %v2108_v17 = vmul.f32 -1.442695, %v1788_v14  ;;  %v1975_v14 = vld [vmem:[%s3236_s7 + $0xd0] sm:$0xff] }
0x2775   :  { %2695 = vpow2.f32 %v2108_v17  ;;  %v2550_v17 = vpack.c.bf16 %v1958_v11, %v1957_v5 }
0x277d   :  { %v2694_v16 = vpop.eup %2693 }
0x277e   :  { %1801 = vrot.lane.b32.xlu1 %v2694_v16, %s2736_s22  ;;  %v1976_v16 = vld [vmem:[%s3236_s7 + $0xd8] sm:$0xff] }
0x277f   :  { %v2696_v18 = vpop.eup %2695 }
0x2780   :  { %v1792_v19 = vadd.f32 1.0, %v2696_v18  ;;  %v2552_v18 = vpack.c.bf16 %v1976_v16, %v1975_v14 }
0x2782   :  { %2697 = vrcp.f32 %v1792_v19  ;;  %v1959_v19 = vld [vmem:[%s3236_s7 + $0x50] sm:$0xff] }
0x278c   :  { %v2698_v20 = vpop.eup %2697 }
0x278d   :  { %v1799_v24 = vmul.f32 %v2698_v20, %v1797_v23 }
0x27f0   :  { %v1802_v21 = vpop.permute.xlu1 %1801 }
0x27f1   :  { %v1804_v22 = vmul.f32 %v2698_v20, %v1802_v21 }
0x27f3   :  { %1806 = vrot.lane.b32.xlu0 %v1804_v22, %s2737_s3 }
0x2865   :  { %v1807_v25 = vpop.permute.xlu0 %1806 }
0x2866   :  { %v3084_v26 = vadd.f32 %v1807_v25, %v1799_v24  ;;  %v1977_v24 = vld [vmem:[%s3236_s7 + $0xe0] sm:$0xff]  ;;  %v1978_v25 = vld [vmem:[%s3236_s7 + $0xe8] sm:$0xff] }
0x2868   :  { %2699 = vtanh.f32 %v3084_v26  ;;  %v1904_v22 = vrot.slane %v3084_v26, 6  ;;  %v1962_v26 = vld [vmem:[%s3236_s7 + $0x68] sm:$0xff] }
0x2872   :  { %v2700_v12 = vpop.eup %2699 }
0x2873   :  { %1812 = vrot.lane.b32.xlu1 %v2700_v12, %s2736_s22 }
0x28e5   :  { %v1813_v27 = vpop.permute.xlu1 %1812 }
0x28e6   :  { %v3088_v31 = vmul.f32 %v2698_v20, %v1813_v27  ;;  %v1960_v20 = vld [vmem:[%s3236_s7 + $0x58] sm:$0xff]  ;;  %v2556_v27 = vpack.c.bf16 %v1978_v25, %v1977_v24 }
0x28e7   :  { %v2554_v21 = vpack.c.bf16 %v1960_v20, %v1959_v19 }
0x28e8   :  { %v1817_v15 = vrot.slane %v3088_v31, 4 }
0x28ea   :  { %1818 = vrot.lane.b32.xlu0 %v1817_v15, %s2737_s3 }
0x295c   :  { %v1819_v32 = vpop.permute.xlu0 %1818 }
0x295d   :  { %2426 = vmatmul.mubr.msk.f32.vlgmr.msra.gmra.mrb[20].mxu1 %vm133_vm3, %v1819_v32  ;;  %v1961_v32 = vld [vmem:[%s3236_s7 + $0x60] sm:$0xff] }
0x2a30   :  { %v1888_v33 = vpop.f32.mrb[20].mxu1 }
0x2a31   :  { %v1893_v34 = vrot.slane %v1888_v33, 2  ;;  %v2427_v36 = vpop.f32.mrb[21].mxu1 }
0x2a32   :  { %v1979_v36 = vld [vmem:[%s3236_s7 + $0xf0] sm:$0xff] }
0x2a33   :  { %v1895_v37 = vadd.f32 %v1893_v34, %v2992_v7  ;;  %v1965_v7 = vld [vmem:[%s3236_s7 + $0x80] sm:$0xff]  ;;  %v2558_v34 = vpack.c.bf16 %v1962_v26, %v1961_v32 }
0x2a34   :  { %v2532_v13 = vpack.c.bf16 %v1966_v46, %v1965_v7 }
0x2a35   :  { %2701 = vtanh.f32 %v1895_v37  ;;  %v2110_v39 = vmul.f32 -1.442695, %v1895_v37  ;;  %v1980_v37 = vld [vmem:[%s3236_s7 + $0xf8] sm:$0xff] }
0x2a36   :  { %2533 = vmatprep.subr.bf16.mxu0 %v2532_v13 }
0x2a37   :  { %2703 = vpow2.f32 %v2110_v39  ;;  %2535 = vmatpush3.bf16.msra.mxu0 %v2534_v52  ;;  %v1963_v39 = vld [vmem:[%s3236_s7 + $0x70] sm:$0xff] }
0x2a38   :  { %2537 = vmatprep.subr.bf16.mxu0 %v2536_v53 }
0x2a3b   :  { %2539 = vmatpush3.bf16.msra.mxu0 %v2538_v58 }
0x2a3c   :  { %2541 = vmatprep.subr.bf16.mxu0 %v2540_v57 }
0x2a3f   :  { %v2702_v38 = vpop.eup %2701  ;;  %2543 = vmatpush3.bf16.msra.mxu0 %v2542_v60 }
0x2a40   :  { %1908 = vrot.lane.b32.xlu1 %v2702_v38, %s2736_s22  ;;  %2545 = vmatprep.subr.bf16.mxu0 %v2544_v6  ;;  %v2560_v38 = vpack.c.bf16 %v1980_v37, %v1979_v36 }
0x2a41   :  { %v2704_v40 = vpop.eup %2703 }
0x2a42   :  { %v1899_v41 = vadd.f32 1.0, %v2704_v40  ;;  %v1964_v40 = vld [vmem:[%s3236_s7 + $0x78] sm:$0xff] }
0x2a43   :  { %2547 = vmatpush3.bf16.msra.mxu0 %v2546_v3 }
0x2a44   :  { %2705 = vrcp.f32 %v1899_v41  ;;  %2549 = vmatprep.subr.bf16.mxu0 %v2548_v4  ;;  %v2562_v41 = vpack.c.bf16 %v1964_v40, %v1963_v39 }
0x2a47   :  { %2551 = vmatpush3.bf16.msra.mxu0 %v2550_v17 }
0x2a48   :  { %2553 = vmatprep.subr.bf16.mxu0 %v2552_v18 }
0x2a4b   :  { %2555 = vmatpush3.bf16.msra.mxu0 %v2554_v21 }
0x2a4c   :  { %2557 = vmatprep.subr.bf16.mxu0 %v2556_v27 }
0x2a4e   :  { %v3097_v42 = vpop.eup %2705 }
0x2a4f   :  { %v1906_v23 = vmul.f32 %v3097_v42, %v1904_v22  ;;  %2559 = vmatpush3.bf16.msra.mxu0 %v2558_v34 }
0x2a50   :  { %2561 = vmatprep.subr.bf16.mxu0 %v2560_v38 }
0x2a53   :  { %2563 = vmatpush3.bf16.msra.mxu0 %v2562_v41 }
0x2ab2   :  { %v1909_v43 = vpop.permute.xlu1 %1908 }
0x2ab3   :  { %v1911_v44 = vmul.f32 %v3097_v42, %v1909_v43 }
0x2ab5   :  { %1913 = vrot.lane.b32.xlu0 %v1911_v44, %s2737_s3  ;;  %v2576_v44 = vpack.i.bf16 %v1393_v2, %v1817_v15 }
0x2ab9   :  { %2572 = vrot.lane.b32.xlu0 %v2571_v45, %s2736_s22 }
0x2b27   :  { %v1914_v12 = vpop.permute.xlu0 %1913 }
0x2b28   :  { %v1916_v33 = vadd.f32 %v1914_v12, %v1906_v23 }
0x2b2a   :  { %2707 = vtanh.f32 %v1916_v33 }
0x2b2b   :  { %v2573_v45 = vpop.permute.xlu0 %2572 }
0x2b2c   :  { %v2575_v46 = vunpack.i.h.bf16 %v2573_v45  ;;  %v2574_v49 = vunpack.i.l.bf16 %v2573_v45 }
0x2b2e   :  { %v1941_v52 = vsel %vm133_vm3, %v3001_v29, %v2575_v46  ;;  %v1946_v1 = vsel %vm133_vm3, %v3066_v50, %v2574_v49 }
0x2b34   :  { %v2708_v43 = vpop.eup %2707 }
0x2b35   :  { %1919 = vrot.lane.b32.xlu1 %v2708_v43, %s2736_s22 }
0x2b39   :  { %2577 = vrot.lane.b32.xlu1 %v2576_v44, %s2738_s24 }
0x2ba7   :  { %v1920_v7 = vpop.permute.xlu1 %1919 }
0x2ba8   :  { %v1922_v13 = vmul.f32 %v3097_v42, %v1920_v7 }
0x2baa   :  { %v1939_v2 = vrot.slane %v1922_v13, 6 }
0x2bab   :  { %v2578_v47 = vpop.permute.xlu1 %2577 }
0x2bac   :  { %v2580_v48 = vunpack.i.h.bf16 %v2578_v47  ;;  %v2579_v51 = vunpack.i.l.bf16 %v2578_v47 }
0x2bae   :  { %v1943_v31 = vsel %vm1942_vm6, %v1941_v52, %v2580_v48  ;;  %v1947_v15 = vsel %vm1942_vm6, %v1946_v1, %v2579_v51 }
0x2baf   :  { %v1948_v53 = vsel %vm1944_vm7, %v1947_v15, %v1939_v2  ;;  %v1945_v54 = vsel %vm1944_vm7, %v1943_v31, %v1500_v30 }
0x2bb0   :  { %2052 = vmatprep.mubr.f32.mxu0 %v1948_v53 }
0x2bb1   :  { %2053 = vmatmul.mubr.f32.vlgmr.msra.gmra.mrb[14].mxu0 %v1945_v54 }
0x2c84   :  { %v2233_v42 = vpop.f32.mrb[14].mxu0 }
0x2c85   :  { %v2234_v55 = vpop.f32.mrb[15].mxu0 }
0x2c86   :  { %v2235_v29 = vadd.f32 %v2234_v55, %v2233_v42 }
0x2c88   :  { %v2055_v50 = vadd.f32 %v2235_v29, %v2111_v35 }
0x2c8a   :  { %2059 = vst.msk [vmem:[#allocation2] sm:$0x3] %vm2058_vm8, %v2055_v50 }
0x2c8b   :  { %2720 = shalt.err (!%p2717_p4)
}
0x2c8c   :  { %s2721_s30 = scalar_lea.hbm %s3238_s9, 32 }
0x2c8d   :  { %p2722_p5 = scmp.ne.s32.totalorder %s3238_s9, %s2721_s30  ;;  %p2725_p6 = scmp.lt.u32.totalorder %s2721_s30, %s3238_s9 }
0x2c8f   :  { %p2727_p7 = pnand %p2725_p6, %p2722_p5 }
0x2c91   :  { %2730 = shalt.err (!%p2727_p7)
}
0x2c92   :  { %2069 = dma.vmem_to_hbm [thread:$0]  %s2067_s26, 32, %s3238_s9, [#allocation3]  }
0x2c93   :  { %2731 = dma.done.wait [#allocation3], 32  }
0x2c94   :  { %2732 = vsyncadd [#allocation3], 4294967264 }
0x2c95   :  { %2073 = vsyncpa [#allocation3], 1 }

</bundles_post_ra>
